<compile_context>
chip_gen: v5e
topology: v5e:2x2
jax: 0.10.0
libtpu: 0.0.40
codegen_flags: <defaults>
</compile_context>

<pallas_src>
import functools

import jax
import jax.numpy as jnp
from jax.experimental import pallas as pl
from jax.experimental.pallas import tpu as pltpu

# ----------------------------- model config ---------------------------------
BATCH        = 2
SEQ_LEN      = 16          # L
EMBED_DIM    = 32          # E  (module default 300; small for demo)
NUM_FILTERS  = 16          # F  (module default 100; small for demo)
WINDOW_SIZES = (3, 4, 5)
NUM_CLASSES  = 2
VOCAB_SIZE   = 50

NEG = jnp.float32(-1e30)   # "-inf" used to mask invalid window tail positions


def _round_up(x, m):
    return (x + m - 1) // m * m


# ------------------------------- kernel -------------------------------------
def textcnn_kernel(x_ref,        # (TB, L_pad, E)        bf16 padded embeddings
                   w_ref,        # (win_max*E, F3_pad)   bf16 fused conv weight
                   bm_ref,       # (L_out_pad, F3_pad)   f32  bias + validity mask
                   fcw_ref,      # (F3_pad, C_pad)       bf16 padded FC weight
                   fcb_ref,      # (1, C_pad)            f32  padded FC bias
                   out_ref,      # (TB, C_pad)           f32  logits (lane-dense)
                   acc_ref,      # (TB*L_out_pad, F3_pad) f32 VMEM scratch
                   *, embed_dim, win_max, l_out_pad):
    tb = x_ref.shape[0]
    f3_pad = w_ref.shape[1]
    m = tb * l_out_pad

    # Fused conv = win_max accumulated K=E matmuls (implicit im2col: no lane
    # concat, no K zero-padding).  Static Python loop -> fully unrolled.
    for k in range(win_max):
        lhs = x_ref[:, k:k + l_out_pad, :].reshape(m, embed_dim)     # bf16
        part = jnp.dot(lhs, w_ref[k * embed_dim:(k + 1) * embed_dim, :],
                       preferred_element_type=jnp.float32)
        if k == 0:
            acc_ref[...] = part
        else:
            acc_ref[...] += part

    conv = acc_ref[...].reshape(tb, l_out_pad, f3_pad)               # f32

    # Bias folded into the additive mask (bias where valid, -1e30 otherwise).
    # NOTE: applying the -1e30 mask BEFORE ReLU is correct only because ReLU
    # clamps masked tail positions to 0, which cannot beat the max over the
    # (>=1) valid non-negative activations.
    act = jnp.maximum(conv + bm_ref[...][None], 0.0)
    pooled = jnp.max(act, axis=1)                                    # (TB, F3_pad)

    # TODO(synk): nn.Dropout(p=0.5) is identity in eval mode; no mask applied.
    logits = jnp.dot(pooled.astype(fcw_ref.dtype), fcw_ref[...],
                     preferred_element_type=jnp.float32) + fcb_ref[...]
    out_ref[...] = logits                                            # lane-dense


# ------------------------------- wrapper -------------------------------------
def textcnn_forward(embedded, conv_ws, conv_bs, fc_w, fc_b,
                    *, window_sizes=WINDOW_SIZES, batch_tile=16):
    """embedded: (B, L, E) float32; returns logits (B, C) float32."""
    B, L, E = embedded.shape
    F = conv_ws[0].shape[-1]
    C = fc_w.shape[-1]
    n_win = len(window_sizes)
    win_max = max(window_sizes)

    l_out_pad = _round_up(L - min(window_sizes) + 1, 8)   # 14 -> 16
    l_pad     = l_out_pad + win_max - 1                   # 20 (padded seq len)
    f3        = n_win * F                                 # 48
    f3_pad    = _round_up(f3, 128)                        # 128
    c_pad     = _round_up(C, 128)                         # 128

    # ---- batch tile: fill MXU M, keep output store sublane-full -------------
    min_tb = (256 + l_out_pad - 1) // l_out_pad           # tb*l_out_pad >= 256
    tb = _round_up(max(batch_tile, min_tb), 8)
    b_pad = _round_up(max(B, tb), tb)
    grid = (b_pad // tb,)

    # ---- fuse + pad parameters (host side, one-time) ------------------------
    # Fused conv weight: row k*E + e is embedding dim e at window offset k;
    # offsets k >= ws are left zero for the branch with window size ws.
    w_fused = jnp.zeros((win_max * E, f3_pad), jnp.float32)
    for j, (w, ws) in enumerate(zip(conv_ws, window_sizes)):
        # w: (ws, E, F) == transpose of PyTorch Conv1d's (F, E, ws).
        w_fused = w_fused.at[:ws * E, j * F:(j + 1) * F].set(w.reshape(ws * E, F))

    # Conv bias folded into the additive validity mask: bias where the window
    # position is valid, -1e30 otherwise (incl. the padded feature lanes).
    t = jnp.arange(l_out_pad)[:, None]
    bm_cols = [jnp.where(t < (L - ws + 1),
                         b.reshape(1, -1).astype(jnp.float32), NEG)
               for b, ws in zip(conv_bs, window_sizes)]
    bm_cols.append(jnp.full((l_out_pad, f3_pad - f3), NEG, jnp.float32))
    bias_mask = jnp.concatenate(bm_cols, axis=1)          # (l_out_pad, f3_pad)

    fcw_pad = jnp.zeros((f3_pad, c_pad), jnp.float32).at[:f3, :C].set(fc_w)
    fcb_pad = jnp.zeros((1, c_pad), jnp.float32).at[0, :C].set(fc_b.reshape(-1))

    # bf16 matmul operands, f32 accumulation.
    w_bf   = w_fused.astype(jnp.bfloat16)
    fcw_bf = fcw_pad.astype(jnp.bfloat16)

    # ---- hoist sequence + batch zero-padding out of the kernel --------------
    x_bf = jnp.zeros((b_pad, l_pad, E), jnp.bfloat16)
    x_bf = x_bf.at[:B, :L, :].set(embedded.astype(jnp.bfloat16))

    kernel = functools.partial(textcnn_kernel, embed_dim=E,
                               win_max=win_max, l_out_pad=l_out_pad)

    def full_spec(a):
        nd = a.ndim
        return pl.BlockSpec(a.shape, lambda i: (0,) * nd)

    # TODO(synk): at production shapes (E=300, F=100 -> f3_pad=384, tb~128),
    # add pipeline_mode=pl.Buffered(1) to the grid-invariant w/bias_mask/fcw
    # specs and set vmem_limit_bytes for v7x's 64 MiB VMEM.
    out = pl.pallas_call(
        kernel,
        out_shape=jax.ShapeDtypeStruct((b_pad, c_pad), jnp.float32),
        grid_spec=pltpu.PrefetchScalarGridSpec(
            num_scalar_prefetch=0,
            grid=grid,
            in_specs=[
                pl.BlockSpec((tb, l_pad, E), lambda i: (i, 0, 0)),
                full_spec(w_bf), full_spec(bias_mask),
                full_spec(fcw_bf), full_spec(fcb_pad),
            ],
            out_specs=pl.BlockSpec((tb, c_pad), lambda i: (i, 0)),
            scratch_shapes=[pltpu.VMEM((tb * l_out_pad, f3_pad), jnp.float32)],
        ),
        compiler_params=pltpu.CompilerParams(
            dimension_semantics=("parallel",)),
    )(x_bf, w_bf, bias_mask, fcw_bf, fcb_pad)
    return out[:B, :C]


# ------------------------------ reference -----------------------------------
def textcnn_reference(embedded, conv_ws, conv_bs, fc_w, fc_b):
    """Per-branch conv / ReLU / max-pool / FC, mirroring the kernel's
    bf16-operand, f32-accumulation numerics (validates the window fusion)."""
    x = embedded.astype(jnp.bfloat16)
    pooled = []
    for w, b in zip(conv_ws, conv_bs):
        ws = w.shape[0]
        l_out = x.shape[1] - ws + 1
        wb = w.astype(jnp.bfloat16)
        conv = jnp.zeros((x.shape[0], l_out, w.shape[-1]), jnp.float32)
        for k in range(ws):
            conv = conv + jax.lax.dot_general(
                x[:, k:k + l_out, :], wb[k],
                dimension_numbers=(((2,), (0,)), ((), ())),
                preferred_element_type=jnp.float32)
        conv = jax.nn.relu(conv + b.reshape(1, 1, -1))
        pooled.append(jnp.max(conv, axis=1))            # (B, F)
    feat = jnp.concatenate(pooled, axis=1)              # (B, 3F) f32
    return jnp.dot(feat.astype(jnp.bfloat16), fc_w.astype(jnp.bfloat16),
                   preferred_element_type=jnp.float32) + fc_b.reshape(1, -1)


# -------------------------------- main ---------------------------------------
if __name__ == "__main__":
    key = jax.random.PRNGKey(0)
    keys = jax.random.split(key, 10)

    # TODO(synk): pretrained GloVe embedding matrix replaced by a deterministic
    # random table; the nn.Embedding row-gather stays in plain JAX glue.
    embedding_table = jax.random.normal(keys[0], (VOCAB_SIZE, EMBED_DIM),
                                        jnp.float32) * 0.1

    # Conv weights stored as (w, E, F) == transpose of PyTorch's (F, E, w).
    conv_ws = tuple(
        jax.random.normal(keys[1 + i], (w, EMBED_DIM, NUM_FILTERS),
                          jnp.float32) * 0.05
        for i, w in enumerate(WINDOW_SIZES))
    conv_bs = tuple(
        jax.random.normal(keys[4 + i], (NUM_FILTERS,), jnp.float32) * 0.05
        for i in range(len(WINDOW_SIZES)))
    fc_w = jax.random.normal(keys[7],
                             (NUM_FILTERS * len(WINDOW_SIZES), NUM_CLASSES),
                             jnp.float32) * 0.05
    fc_b = jax.random.normal(keys[8], (NUM_CLASSES,), jnp.float32) * 0.05

    # Integer token ids -> embedding lookup (gather) done in plain JAX glue.
    tokens = jax.random.randint(keys[9], (BATCH, SEQ_LEN), 0, VOCAB_SIZE)
    embedded = embedding_table[tokens]                   # (B, L, E) float32

    logits = textcnn_forward(embedded, conv_ws, conv_bs, fc_w, fc_b)
    logits = jax.block_until_ready(logits)

    ref = textcnn_reference(embedded, conv_ws, conv_bs, fc_w, fc_b)
    assert logits.shape == (BATCH, NUM_CLASSES)
    # Both paths use bf16 operands with f32 accumulation; tolerance covers
    # f32 accumulation-order differences between the fused-per-offset and
    # per-branch formulations.
    assert jnp.allclose(logits, ref, atol=1e-3, rtol=1e-3), (logits, ref)

    print("KERNEL_OK")
</pallas_src>

<mosaic_0001>
module attributes {stable_mosaic.version = 11 : i64} {
  func.func @textcnn_kernel(%arg0: i32, %arg1: memref<16x20x32xbf16, #tpu.memory_space<vmem>>, %arg2: memref<160x128xbf16, #tpu.memory_space<vmem>>, %arg3: memref<16x128xf32, #tpu.memory_space<vmem>>, %arg4: memref<128x128xbf16, #tpu.memory_space<vmem>>, %arg5: memref<1x128xf32, #tpu.memory_space<vmem>>, %arg6: memref<16x128xf32, #tpu.memory_space<vmem>>, %arg7: memref<256x128xf32, #tpu.memory_space<vmem>>) attributes {dimension_semantics = [#tpu.dimension_semantics<parallel>], iteration_bounds = array<i64: 1>, scalar_prefetch = 0 : i64, scratch_operands = 1 : i64, tpu.core_type = #tpu.core_type<tc>, window_params = [{transform_indices = @transform_0, window_bounds = array<i64: 16, 20, 32>}, {pipeline_mode = #tpu.pipeline_mode<synchronous>, transform_indices = @transform_1, window_bounds = array<i64: 160, 128>}, {pipeline_mode = #tpu.pipeline_mode<synchronous>, transform_indices = @transform_2, window_bounds = array<i64: 16, 128>}, {pipeline_mode = #tpu.pipeline_mode<synchronous>, transform_indices = @transform_3, window_bounds = array<i64: 128, 128>}, {pipeline_mode = #tpu.pipeline_mode<synchronous>, transform_indices = @transform_4, window_bounds = array<i64: 1, 128>}, {transform_indices = @transform_5, window_bounds = array<i64: 16, 128>}]} {
    %c0 = arith.constant 0 : index
    %c0_0 = arith.constant 0 : index
    %c0_1 = arith.constant 0 : index
    %0 = vector.load %arg1[%c0, %c0_0, %c0_1] : memref<16x20x32xbf16, #tpu.memory_space<vmem>>, vector<16x16x32xbf16>
    %1 = vector.shape_cast %0 : vector<16x16x32xbf16> to vector<256x32xbf16>
    %c0_2 = arith.constant 0 : index
    %c0_3 = arith.constant 0 : index
    %2 = vector.load %arg2[%c0_2, %c0_3] : memref<160x128xbf16, #tpu.memory_space<vmem>>, vector<32x128xbf16>
    %cst = arith.constant dense<0.000000e+00> : vector<256x128xf32>
    %3 = tpu.matmul %1, %2, %cst {dimension_numbers = #tpu.dot_dimension_numbers<[1], [0], [0], [1], [0, 0, 1, 1], [], []>} : vector<256x32xbf16>, vector<32x128xbf16>, vector<256x128xf32> -> vector<256x128xf32>
    %c0_4 = arith.constant 0 : index
    %c0_5 = arith.constant 0 : index
    %4 = vector.load %arg7[%c0_4, %c0_5] : memref<256x128xf32, #tpu.memory_space<vmem>>, vector<256x128xf32>
    tpu.vector_store %arg7[%c0_4, %c0_5], %3 {strides = array<i32>} : memref<256x128xf32, #tpu.memory_space<vmem>>, vector<256x128xf32>,
    %c0_6 = arith.constant 0 : index
    %c1 = arith.constant 1 : index
    %c0_7 = arith.constant 0 : index
    %5 = vector.load %arg1[%c0_6, %c1, %c0_7] : memref<16x20x32xbf16, #tpu.memory_space<vmem>>, vector<16x16x32xbf16>
    %6 = vector.shape_cast %5 : vector<16x16x32xbf16> to vector<256x32xbf16>
    %c32 = arith.constant 32 : index
    %c0_8 = arith.constant 0 : index
    %7 = vector.load %arg2[%c32, %c0_8] : memref<160x128xbf16, #tpu.memory_space<vmem>>, vector<32x128xbf16>
    %cst_9 = arith.constant dense<0.000000e+00> : vector<256x128xf32>
    %8 = tpu.matmul %6, %7, %cst_9 {dimension_numbers = #tpu.dot_dimension_numbers<[1], [0], [0], [1], [0, 0, 1, 1], [], []>} : vector<256x32xbf16>, vector<32x128xbf16>, vector<256x128xf32> -> vector<256x128xf32>
    %c0_10 = arith.constant 0 : index
    %c0_11 = arith.constant 0 : index
    %9 = vector.load %arg7[%c0_10, %c0_11] : memref<256x128xf32, #tpu.memory_space<vmem>>, vector<256x128xf32>
    %10 = arith.addf %9, %8 : vector<256x128xf32>
    %c0_12 = arith.constant 0 : index
    %c0_13 = arith.constant 0 : index
    %11 = vector.load %arg7[%c0_12, %c0_13] : memref<256x128xf32, #tpu.memory_space<vmem>>, vector<256x128xf32>
    tpu.vector_store %arg7[%c0_12, %c0_13], %10 {strides = array<i32>} : memref<256x128xf32, #tpu.memory_space<vmem>>, vector<256x128xf32>,
    %c0_14 = arith.constant 0 : index
    %c2 = arith.constant 2 : index
    %c0_15 = arith.constant 0 : index
    %12 = vector.load %arg1[%c0_14, %c2, %c0_15] : memref<16x20x32xbf16, #tpu.memory_space<vmem>>, vector<16x16x32xbf16>
    %13 = vector.shape_cast %12 : vector<16x16x32xbf16> to vector<256x32xbf16>
    %c64 = arith.constant 64 : index
    %c0_16 = arith.constant 0 : index
    %14 = vector.load %arg2[%c64, %c0_16] : memref<160x128xbf16, #tpu.memory_space<vmem>>, vector<32x128xbf16>
    %cst_17 = arith.constant dense<0.000000e+00> : vector<256x128xf32>
    %15 = tpu.matmul %13, %14, %cst_17 {dimension_numbers = #tpu.dot_dimension_numbers<[1], [0], [0], [1], [0, 0, 1, 1], [], []>} : vector<256x32xbf16>, vector<32x128xbf16>, vector<256x128xf32> -> vector<256x128xf32>
    %c0_18 = arith.constant 0 : index
    %c0_19 = arith.constant 0 : index
    %16 = vector.load %arg7[%c0_18, %c0_19] : memref<256x128xf32, #tpu.memory_space<vmem>>, vector<256x128xf32>
    %17 = arith.addf %16, %15 : vector<256x128xf32>
    %c0_20 = arith.constant 0 : index
    %c0_21 = arith.constant 0 : index
    %18 = vector.load %arg7[%c0_20, %c0_21] : memref<256x128xf32, #tpu.memory_space<vmem>>, vector<256x128xf32>
    tpu.vector_store %arg7[%c0_20, %c0_21], %17 {strides = array<i32>} : memref<256x128xf32, #tpu.memory_space<vmem>>, vector<256x128xf32>,
    %c0_22 = arith.constant 0 : index
    %c3 = arith.constant 3 : index
    %c0_23 = arith.constant 0 : index
    %19 = vector.load %arg1[%c0_22, %c3, %c0_23] : memref<16x20x32xbf16, #tpu.memory_space<vmem>>, vector<16x16x32xbf16>
    %20 = vector.shape_cast %19 : vector<16x16x32xbf16> to vector<256x32xbf16>
    %c96 = arith.constant 96 : index
    %c0_24 = arith.constant 0 : index
    %21 = vector.load %arg2[%c96, %c0_24] : memref<160x128xbf16, #tpu.memory_space<vmem>>, vector<32x128xbf16>
    %cst_25 = arith.constant dense<0.000000e+00> : vector<256x128xf32>
    %22 = tpu.matmul %20, %21, %cst_25 {dimension_numbers = #tpu.dot_dimension_numbers<[1], [0], [0], [1], [0, 0, 1, 1], [], []>} : vector<256x32xbf16>, vector<32x128xbf16>, vector<256x128xf32> -> vector<256x128xf32>
    %c0_26 = arith.constant 0 : index
    %c0_27 = arith.constant 0 : index
    %23 = vector.load %arg7[%c0_26, %c0_27] : memref<256x128xf32, #tpu.memory_space<vmem>>, vector<256x128xf32>
    %24 = arith.addf %23, %22 : vector<256x128xf32>
    %c0_28 = arith.constant 0 : index
    %c0_29 = arith.constant 0 : index
    %25 = vector.load %arg7[%c0_28, %c0_29] : memref<256x128xf32, #tpu.memory_space<vmem>>, vector<256x128xf32>
    tpu.vector_store %arg7[%c0_28, %c0_29], %24 {strides = array<i32>} : memref<256x128xf32, #tpu.memory_space<vmem>>, vector<256x128xf32>,
    %c0_30 = arith.constant 0 : index
    %c4 = arith.constant 4 : index
    %c0_31 = arith.constant 0 : index
    %26 = vector.load %arg1[%c0_30, %c4, %c0_31] : memref<16x20x32xbf16, #tpu.memory_space<vmem>>, vector<16x16x32xbf16>
    %27 = vector.shape_cast %26 : vector<16x16x32xbf16> to vector<256x32xbf16>
    %c128 = arith.constant 128 : index
    %c0_32 = arith.constant 0 : index
    %28 = vector.load %arg2[%c128, %c0_32] : memref<160x128xbf16, #tpu.memory_space<vmem>>, vector<32x128xbf16>
    %cst_33 = arith.constant dense<0.000000e+00> : vector<256x128xf32>
    %29 = tpu.matmul %27, %28, %cst_33 {dimension_numbers = #tpu.dot_dimension_numbers<[1], [0], [0], [1], [0, 0, 1, 1], [], []>} : vector<256x32xbf16>, vector<32x128xbf16>, vector<256x128xf32> -> vector<256x128xf32>
    %c0_34 = arith.constant 0 : index
    %c0_35 = arith.constant 0 : index
    %30 = vector.load %arg7[%c0_34, %c0_35] : memref<256x128xf32, #tpu.memory_space<vmem>>, vector<256x128xf32>
    %31 = arith.addf %30, %29 : vector<256x128xf32>
    %c0_36 = arith.constant 0 : index
    %c0_37 = arith.constant 0 : index
    %32 = vector.load %arg7[%c0_36, %c0_37] : memref<256x128xf32, #tpu.memory_space<vmem>>, vector<256x128xf32>
    tpu.vector_store %arg7[%c0_36, %c0_37], %31 {strides = array<i32>} : memref<256x128xf32, #tpu.memory_space<vmem>>, vector<256x128xf32>,
    %c0_38 = arith.constant 0 : index
    %c0_39 = arith.constant 0 : index
    %33 = vector.load %arg7[%c0_38, %c0_39] : memref<256x128xf32, #tpu.memory_space<vmem>>, vector<256x128xf32>
    %34 = vector.shape_cast %33 : vector<256x128xf32> to vector<16x16x128xf32>
    %c0_40 = arith.constant 0 : index
    %c0_41 = arith.constant 0 : index
    %35 = vector.load %arg3[%c0_40, %c0_41] : memref<16x128xf32, #tpu.memory_space<vmem>>, vector<16x128xf32>
    %36 = vector.shape_cast %35 : vector<16x128xf32> to vector<1x16x128xf32>
    %37 = vector.broadcast %36 : vector<1x16x128xf32> to vector<16x16x128xf32>
    %38 = arith.addf %34, %37 : vector<16x16x128xf32>
    %cst_42 = arith.constant 0.000000e+00 : f32
    %39 = vector.broadcast %cst_42 : f32 to vector<16x16x128xf32>
    %40 = arith.maximumf %38, %39 : vector<16x16x128xf32>
    %cst_43 = arith.constant dense<0xFF800000> : vector<16x128xf32>
    %41 = vector.multi_reduction <maximumf>, %40, %cst_43 [1] : vector<16x16x128xf32> to vector<16x128xf32>
    %42 = arith.truncf %41 : vector<16x128xf32> to vector<16x128xbf16>
    %c0_44 = arith.constant 0 : index
    %c0_45 = arith.constant 0 : index
    %43 = vector.load %arg4[%c0_44, %c0_45] : memref<128x128xbf16, #tpu.memory_space<vmem>>, vector<128x128xbf16>
    %cst_46 = arith.constant dense<0.000000e+00> : vector<16x128xf32>
    %44 = tpu.matmul %42, %43, %cst_46 {dimension_numbers = #tpu.dot_dimension_numbers<[1], [0], [0], [1], [0, 0, 1, 1], [], []>} : vector<16x128xbf16>, vector<128x128xbf16>, vector<16x128xf32> -> vector<16x128xf32>
    %c0_47 = arith.constant 0 : index
    %c0_48 = arith.constant 0 : index
    %45 = vector.load %arg5[%c0_47, %c0_48] : memref<1x128xf32, #tpu.memory_space<vmem>>, vector<1x128xf32>
    %46 = vector.broadcast %45 : vector<1x128xf32> to vector<16x128xf32>
    %47 = arith.addf %44, %46 : vector<16x128xf32>
    %c0_49 = arith.constant 0 : index
    %c0_50 = arith.constant 0 : index
    %48 = vector.load %arg6[%c0_49, %c0_50] : memref<16x128xf32, #tpu.memory_space<vmem>>, vector<16x128xf32>
    tpu.vector_store %arg6[%c0_49, %c0_50], %47 {strides = array<i32>} : memref<16x128xf32, #tpu.memory_space<vmem>>, vector<16x128xf32>,
    return
  }
  func.func @transform_0(%arg0: i32) -> (i32, i32, i32) {
    %c0_i32 = arith.constant 0 : i32
    %c0_i32_0 = arith.constant 0 : i32
    %c0_i32_1 = arith.constant 0 : i32
    return %arg0, %c0_i32, %c0_i32_0 : i32, i32, i32
  }
  func.func @transform_1(%arg0: i32) -> (i32, i32) {
    %c0_i32 = arith.constant 0 : i32
    %c0_i32_0 = arith.constant 0 : i32
    %c0_i32_1 = arith.constant 0 : i32
    return %c0_i32, %c0_i32_0 : i32, i32
  }
  func.func @transform_2(%arg0: i32) -> (i32, i32) {
    %c0_i32 = arith.constant 0 : i32
    %c0_i32_0 = arith.constant 0 : i32
    %c0_i32_1 = arith.constant 0 : i32
    return %c0_i32, %c0_i32_0 : i32, i32
  }
  func.func @transform_3(%arg0: i32) -> (i32, i32) {
    %c0_i32 = arith.constant 0 : i32
    %c0_i32_0 = arith.constant 0 : i32
    %c0_i32_1 = arith.constant 0 : i32
    return %c0_i32, %c0_i32_0 : i32, i32
  }
  func.func @transform_4(%arg0: i32) -> (i32, i32) {
    %c0_i32 = arith.constant 0 : i32
    %c0_i32_0 = arith.constant 0 : i32
    %c0_i32_1 = arith.constant 0 : i32
    return %c0_i32, %c0_i32_0 : i32, i32
  }
  func.func @transform_5(%arg0: i32) -> (i32, i32) {
    %c0_i32 = arith.constant 0 : i32
    %c0_i32_0 = arith.constant 0 : i32
    return %arg0, %c0_i32 : i32, i32
  }
}

</mosaic_0001>

<bundles_post_ra>
// kernel: tpu_custom_call.1
= control target key start
LH: loop header
LB: loop body
LE: loop exit
PB: predicated region body
PF: predicated region fallthrough
CT: control target
= control target key end

     0   :  { %vm150_vm0 = vcmask 261120   ;;  %vm368_vm1 = vsmask.f32 3328  ;;  %vm369_vm2 = vsmask.f32 7440  ;;  %s5063_s0 = inlined_call_operand.vmem [shape: bf16[16,20,32], index: 0, kind: input, shape index: {}]   ;;  %s5064_s1 = inlined_call_operand.vmem [shape: bf16[160,128], index: 1, kind: input, shape index: {}]   ;;  %s5065_s2 = inlined_call_operand.vmem [shape: f32[16,128], index: 2, kind: input, shape index: {}]   ;;  %s5066_s3 = inlined_call_operand.vmem [shape: bf16[128,128], index: 3, kind: input, shape index: {}]   ;;  %s5067_s4 = inlined_call_operand.vmem [shape: f32[1,128], index: 4, kind: input, shape index: {}]   ;;  %s5068_s5 = inlined_call_operand.hbm [shape: f32[16,128], index: 5, kind: output, shape index: {}]  }
   0x1   :  { %v3512_v0 = vld [vmem:[%s5064_s1 + $0x8] sm:$0xff]  ;;  %v3511_v1 = vld [vmem:[%s5064_s1] sm:$0xff]  ;;  %v3518_v5 = vld [vmem:[%s5064_s1 + $0x38] sm:$0xff] }
   0x2   :  { %3529 = vmatpush.bf16.msra.mxu1 %v3512_v0  ;;  %3530 = vmatpush.bf16.msra.mxu2 %v3512_v0  ;;  %v3500_v2 = vld [vmem:[%s5063_s0 + $0x3c] sm:$0xff]  ;;  %v3501_v3 = vld [vmem:[%s5063_s0 + $0x48] sm:$0xff]  ;;  %v321_v7 = vld [vmem:[%s5063_s0 + $0x4] sm:$0xf] }
   0x3   :  { %3531 = vmatpush.bf16.msra.mxu3 %v3512_v0  ;;  %205 = vmatpush.bf16.msra.mxu0 %v3512_v0  ;;  %v3516_v4 = vld [vmem:[%s5064_s1 + $0x28] sm:$0xff]  ;;  %v320_v6 = vld [vmem:[%s5063_s0] sm:$0xf]  ;;  %v381_v11 = vshll.u32 %v321_v7, 16  ;;  %v385_v12 = vshrl.u32 %v321_v7, 16  ;;  %v3514_v16 = vld [vmem:[%s5064_s1 + $0x18] sm:$0xff] }
   0x4   :  { %v322_v8 = vld [vmem:[%s5063_s0 + $0x8] sm:$0x1]  ;;  %v372_v9 = vshrl.u32 %v320_v6, 16  ;;  %v375_v10 = vshll.u32 %v320_v6, 16  ;;  %v3495_v14 = vld [vmem:[%s5063_s0] sm:$0xff] }
   0x5   :  { %v3506_v13 = vld [vmem:[%s5063_s0 + $0x84] sm:$0xff]  ;;  %v391_v15 = vshll.u32 %v322_v8, 16  ;;  %v383_v20 = vrot.slane %v381_v11, 5  ;;  %v387_v21 = vrot.slane %v385_v12, 4 }
   0x6   :  { %3532 = vmatpush.bf16.msra.mxu1 %v3511_v1  ;;  %3533 = vmatpush.bf16.msra.mxu2 %v3511_v1  ;;  %v3520_v17 = vld [vmem:[%s5064_s1 + $0x48] sm:$0xff]  ;;  %v374_v18 = vrot.slane %v372_v9, 4  ;;  %v377_v19 = vrot.slane %v375_v10, 5 }
   0x7   :  { %3534 = vmatpush.bf16.msra.mxu3 %v3511_v1  ;;  %206 = vmatpush.bf16.msra.mxu0 %v3511_v1  ;;  %v388_v23 = vor.u32 %v387_v21, %v383_v20 }
   0x8   :  { %v378_v22 = vor.u32 %v377_v19, %v374_v18 }
   0x9   :  { %3324 = vmatmul.msk.bf16.vlgmr.msra.gmra.mxu1 %vm150_vm0, %v3500_v2  ;;  %3325 = vmatmul.msk.bf16.vlgmr.msra.gmra.mxu2 %vm150_vm0, %v3501_v3 }
   0xa   :  { %1381 = vmatpush.bf16.msrb.mxu2 %v3516_v4 }
   0xb   :  { %2177 = vmatpush.bf16.msrb.mxu3 %v3518_v5 }
   0xc   :  { %10 = vsyncpa [#allocation4], 0  ;;  %3330 = vmatmul.msk.bf16.vlgmr.msra.gmra.mxu3 %vm150_vm0, %v3506_v13  ;;  %3319 = vmatmul.msk.bf16.vlgmr.msra.gmra.mxu0 %vm150_vm0, %v3495_v14  ;;  %v393_v24 = vrot.slane %v391_v15, 5  ;;  %v323_v25 = vld [vmem:[%s5063_s0 + $0xc] sm:$0xf]  ;;  %v3515_v26 = vld [vmem:[%s5064_s1 + $0x20] sm:$0xff] }
   0xd   :  { %v3517_v27 = vld [vmem:[%s5064_s1 + $0x30] sm:$0xff]  ;;  %873 = vmatpush.bf16.msrb.mxu1 %v3514_v16  ;;  %2685 = vmatpush.bf16.msrb.mxu0 %v3520_v17  ;;  %vm3657_vm3 = vmor %vm368_vm1, %vm369_vm2  ;;  %v379_v30 = vrot.slane %v378_v22, 4  ;;  %v389_v31 = vrot.slane %v388_v23, 4  ;;  %v396_v33 = vshrl.u32 %v323_v25, 16  ;;  %v399_v34 = vshll.u32 %v323_v25, 16  ;;  %v3519_v57 = vld [vmem:[%s5064_s1 + $0x40] sm:$0xff] }
   0xe   :  { %v3513_v28 = vld [vmem:[%s5064_s1 + $0x10] sm:$0xff]  ;;  %1382 = vmatpush.bf16.msrb.mxu2 %v3515_v26  ;;  %v326_v56 = vld [vmem:[%s5063_s0 + $0x18] sm:$0xf]  ;;  %v327_v58 = vld [vmem:[%s5063_s0 + $0x1c] sm:$0xf]  ;;  %vm1148_vm4 = vcmask 1042432  }
   0xf   :  { %v324_v32 = vld [vmem:[%s5063_s0 + $0x10] sm:$0xf]  ;;  %2178 = vmatpush.bf16.msrb.mxu3 %v3517_v27  ;;  %v384_v35 = vsel %vm3657_vm3, %v379_v30, %v383_v20  ;;  %v394_v36 = vsel %vm3657_vm3, %v389_v31, %v393_v24  ;;  %v398_v41 = vrot.slane %v396_v33, 4  ;;  %v401_v42 = vrot.slane %v399_v34, 5  ;;  %v325_v45 = vld [vmem:[%s5063_s0 + $0x14] sm:$0x1] }
  0x10   :  { %v405_v37 = vshll.u32 %v324_v32, 16  ;;  %v409_v38 = vshrl.u32 %v324_v32, 16  ;;  %v759_v39 = vunpack.c.l.b16 %v384_v35  ;;  %v760_v40 = vunpack.c.l.b16 %v394_v36  ;;  %v3502_v46 = vld [vmem:[%s5063_s0 + $0x54] sm:$0xff]  ;;  %v3496_v49 = vld [vmem:[%s5063_s0 + $0xc] sm:$0xff]  ;;  %v328_v7 = vld [vmem:[%s5063_s0 + $0x20] sm:$0x1] }
  0x11   :  { %874 = vmatpush.bf16.msrb.mxu1 %v3513_v28  ;;  %v3507_v48 = vld [vmem:[%s5063_s0 + $0x90] sm:$0xff]  ;;  %v402_v50 = vor.u32 %v401_v42, %v398_v41  ;;  %v415_v52 = vshll.u32 %v325_v45, 16  ;;  %2686 = vmatpush.bf16.msrb.mxu0 %v3519_v57  ;;  %v420_v59 = vshrl.u32 %v326_v56, 16  ;;  %v423_v60 = vshll.u32 %v326_v56, 16  ;;  %v3503_v8 = vld [vmem:[%s5063_s0 + $0x60] sm:$0xff]  ;;  %v3497_v12 = vld [vmem:[%s5063_s0 + $0x18] sm:$0xff] }
  0x12   :  { %v407_v43 = vrot.slane %v405_v37, 5  ;;  %v411_v44 = vrot.slane %v409_v38, 4  ;;  %v791_v47 = vpack.c.b16 %v760_v40, %v759_v39  ;;  %v429_v63 = vshll.u32 %v327_v58, 16  ;;  %v3508_v11 = vld [vmem:[%s5063_s0 + $0x9c] sm:$0xff]  ;;  %v329_v15 = vld [vmem:[%s5063_s0 + $0x24] sm:$0xf] }
  0x13   :  { %v403_v53 = vrot.slane %v402_v50, 4  ;;  %v417_v55 = vrot.slane %v415_v52, 5  ;;  %v433_v0 = vshrl.u32 %v327_v58, 16  ;;  %v422_v3 = vrot.slane %v420_v59, 4  ;;  %v330_v16 = vld [vmem:[%s5063_s0 + $0x28] sm:$0xf] }
  0x14   :  { %v412_v51 = vor.u32 %v411_v44, %v407_v43  ;;  %v425_v4 = vrot.slane %v423_v60, 5  ;;  %v431_v5 = vrot.slane %v429_v63, 5  ;;  %v439_v14 = vshll.u32 %v328_v7, 16  ;;  %v331_v31 = vld [vmem:[%s5063_s0 + $0x2c] sm:$0x1]  ;;  %s3567_s11 = smov [#allocation3]  }
  0x15   :  { %v408_v61 = vsel %vm3657_vm3, %v403_v53, %v407_v43  ;;  %v435_v6 = vrot.slane %v433_v0, 4  ;;  %v444_v20 = vshrl.u32 %v329_v15, 16  ;;  %v447_v21 = vshll.u32 %v329_v15, 16  ;;  %v332_v34 = vld [vmem:[%s5063_s0 + $0x30] sm:$0xf]  ;;  %v3509_v45 = vld [vmem:[%s5063_s0 + $0xa8] sm:$0xff] }
  0x16   :  { %v413_v54 = vrot.slane %v412_v51, 4  ;;  %v761_v1 = vunpack.c.l.b16 %v408_v61  ;;  %v426_v10 = vor.u32 %v425_v4, %v422_v3  ;;  %v441_v19 = vrot.slane %v439_v14, 5  ;;  %v333_v35 = vld [vmem:[%s5063_s0 + $0x34] sm:$0xf]  ;;  %v3504_v43 = vld [vmem:[%s5063_s0 + $0x6c] sm:$0xff]  ;;  %s3233_s12 = sshll.u32 %s3567_s11, 4  ;;  %s3234_s12 = int_to_ptr.vmem [resolvable:$true] %s3233_s12 }
  0x17   :  { %v436_v13 = vor.u32 %v435_v6, %v431_v5  ;;  %v453_v22 = vshll.u32 %v330_v16, 16  ;;  %v457_v23 = vshrl.u32 %v330_v16, 16  ;;  %v446_v26 = vrot.slane %v444_v20, 4  ;;  %v334_v50 = vld [vmem:[%s5063_s0 + $0x38] sm:$0x1]  ;;  %s3235_s15 = sshll.u32 %s5068_s5, 4  ;;  %s3236_s15 = int_to_ptr.hbm [resolvable:$true] %s3235_s15 }
  0x18   :  { %v418_v62 = vsel %vm3657_vm3, %v413_v54, %v417_v55  ;;  %v427_v17 = vrot.slane %v426_v10, 4  ;;  %v449_v27 = vrot.slane %v447_v21, 5  ;;  %v463_v38 = vshll.u32 %v331_v31, 16  ;;  %v1560_v51 = vld [vmem:[%s5063_s0] sm:$0xe]  ;;  %s3568_s16 = smov 128  }
  0x19   :  { %3326 = vmatmul.msk.bf16.gmra.mxu2 %vm150_vm0, %v3502_v46  ;;  %3343 = vmatmul.msk.bf16.vlgmr.msrb.gmra.mxu1 %vm150_vm0, %v791_v47  ;;  %v762_v2 = vunpack.c.l.b16 %v418_v62  ;;  %v437_v18 = vrot.slane %v436_v13, 4  ;;  %v455_v28 = vrot.slane %v453_v22, 5  ;;  %v459_v30 = vrot.slane %v457_v23, 4  ;;  %v3498_v46 = vld [vmem:[%s5063_s0 + $0x24] sm:$0xff]  ;;  %v335_v6 = vld [vmem:[%s5063_s0 + $0x3c] sm:$0xf] }
  0x1a   :  { %v432_v24 = vsel %vm3657_vm3, %v427_v17, %v431_v5  ;;  %v450_v36 = vor.u32 %v449_v27, %v446_v26  ;;  %v468_v39 = vshrl.u32 %v332_v34, 16  ;;  %v471_v40 = vshll.u32 %v332_v34, 16  ;;  %v1561_v56 = vld [vmem:[%s5063_s0 + $0x4] sm:$0xf]  ;;  %v1562_v0 = vld [vmem:[%s5063_s0 + $0x8] sm:$0x3] }
  0x1b   :  { %v792_v9 = vpack.c.b16 %v762_v2, %v761_v1  ;;  %v442_v25 = vsel %vm3657_vm3, %v437_v18, %v441_v19  ;;  %v763_v32 = vunpack.c.l.b16 %v432_v24  ;;  %v460_v37 = vor.u32 %v459_v30, %v455_v28  ;;  %v1052_v17 = vld [vmem:[%s5063_s0] sm:$0xe]  ;;  %v2357_v18 = vld [vmem:[%s5063_s0 + $0x4] sm:$0xf]  ;;  %v1054_v26 = vld [vmem:[%s5063_s0 + $0x8] sm:$0x1] }
  0x1c   :  { %3331 = vmatmul.msk.bf16.gmra.mxu3 %vm150_vm0, %v3507_v48  ;;  %3320 = vmatmul.msk.bf16.gmra.mxu0 %vm150_vm0, %v3496_v49  ;;  %v764_v33 = vunpack.c.l.b16 %v442_v25  ;;  %v477_v41 = vshll.u32 %v333_v35, 16  ;;  %v481_v42 = vshrl.u32 %v333_v35, 16  ;;  %v451_v47 = vrot.slane %v450_v36, 4  ;;  %v3505_v25 = vld [vmem:[%s5063_s0 + $0x78] sm:$0xff]  ;;  %v2358_v34 = vld [vmem:[%s5063_s0 + $0x8] sm:$0x3] }
  0x1d   :  { %v461_v48 = vrot.slane %v460_v37, 4  ;;  %v465_v49 = vrot.slane %v463_v38, 5  ;;  %v470_v52 = vrot.slane %v468_v39, 4  ;;  %v473_v53 = vrot.slane %v471_v40, 5  ;;  %v3510_v38 = vld [vmem:[%s5063_s0 + $0xb4] sm:$0xff]  ;;  %s3569_s17 = smov 8  }
  0x1e   :  { %v793_v44 = vpack.c.b16 %v764_v33, %v763_v32  ;;  %v3747_v54 = vrot.slane %v477_v41, 5  ;;  %v483_v55 = vrot.slane %v481_v42, 4  ;;  %v487_v57 = vshll.u32 %v334_v50, 16  ;;  %v2356_v33 = vld [vmem:[%s5063_s0] sm:$0xc]  ;;  %v3499_v39 = vld [vmem:[%s5063_s0 + $0x30] sm:$0xff] }
  0x1f   :  { %v1612_v58 = vshrl.u32 %v1560_v51, 16  ;;  %v1615_v59 = vshll.u32 %v1560_v51, 16  ;;  %v456_v60 = vsel %vm3657_vm3, %v451_v47, %v455_v28  ;;  %v466_v61 = vsel %vm3657_vm3, %v461_v48, %v465_v49  ;;  %v337_v47 = vld [vmem:[%s5063_s0 + $0x44] sm:$0x1]  ;;  %v1597_v29 = vld [vmem:[%s5063_s0 + $0x94] sm:$0xf] }
  0x20   :  { %v474_v62 = vor.u32 %v473_v53, %v470_v52  ;;  %v484_v63 = vor.u32 %v483_v55, %v3747_v54  ;;  %v1621_v1 = vshrl.u32 %v1561_v56, 16  ;;  %v1624_v2 = vshll.u32 %v1561_v56, 16 }
  0x21   :  { %v3764_v3 = vrot.slane %v487_v57, 5  ;;  %v1614_v4 = vrot.slane %v1612_v58, 5  ;;  %v1617_v5 = vrot.slane %v1615_v59, 6  ;;  %v765_v7 = vunpack.c.l.b16 %v456_v60  ;;  %v1563_v58 = vld [vmem:[%s5063_s0 + $0xc] sm:$0xe] }
  0x22   :  { %v1631_v10 = vshrl.u32 %v1562_v0, 16  ;;  %v3777_v13 = vrot.slane %v474_v62, 4  ;;  %v3779_v14 = vrot.slane %v484_v63, 4  ;;  %v1623_v15 = vrot.slane %v1621_v1, 5  ;;  %v1564_v59 = vld [vmem:[%s5063_s0 + $0x10] sm:$0xf] }
  0x23   :  { %v1626_v16 = vrot.slane %v1624_v2, 6  ;;  %v492_v19 = vshrl.u32 %v335_v6, 16  ;;  %v495_v20 = vshll.u32 %v335_v6, 16  ;;  %v1618_v22 = vor.u32 %v1617_v5, %v1614_v4 }
  0x24   :  { %vm1149_vm5 = vcmask 1046532   ;;  %v1633_v27 = vrot.slane %v1631_v10, 5  ;;  %v3359_v31 = vrot.slane %v1052_v17, 9  ;;  %v2457_v35 = vrot.slane %v2357_v18, 6 }
  0x25   :  { %v1627_v32 = vor.u32 %v1626_v16, %v1623_v15  ;;  %vm1608_vm6 = vsmask.f32 2304  ;;  %vm1609_vm7 = vsmask.f32 6416  ;;  %v494_v36 = vrot.slane %v492_v19, 4  ;;  %vm3810_vm10 = vmor %vm1148_vm4, %vm1149_vm5 }
  0x26   :  { %v497_v37 = vrot.slane %v495_v20, 5  ;;  %vm2452_vm8 = vcmask 1041408   ;;  %vm2453_vm9 = vcmask 1045508   ;;  %vm3819_vm11 = vmor %vm1608_vm6, %vm1609_vm7  ;;  %v3423_v50 = vrot.slane %v2356_v33, 10  ;;  %v1565_v16 = vld [vmem:[%s5063_s0 + $0x14] sm:$0x3] }
  0x27   :  { %v1629_v49 = vrot.slane %v1627_v32, 4  ;;  %v2459_v51 = vrot.slane %v2457_v35, 4  ;;  %v2460_v52 = vrot.slane %v2358_v34, 6  ;;  %vm3827_vm12 = vmor %vm2452_vm8, %vm2453_vm9  ;;  %v511_v57 = vshll.u32 %v337_v47, 16  ;;  %v1055_v20 = vld [vmem:[%s5063_s0 + $0xc] sm:$0xe] }
  0x28   :  { %v498_v55 = vor.u32 %v497_v37, %v494_v36  ;;  %v480_v60 = vsel %vm3657_vm3, %v3777_v13, %v3747_v54  ;;  %v2458_v54 = vsel %vm3827_vm12, %v3423_v50, %v2457_v35  ;;  %v1640_v5 = vshrl.u32 %v1563_v58, 16  ;;  %v2360_v34 = vld [vmem:[%s5063_s0 + $0x10] sm:$0xf]  ;;  %v1566_v47 = vld [vmem:[%s5063_s0 + $0x18] sm:$0xe] }
  0x29   :  { %3327 = vmatmul.msk.bf16.gmra.mxu2 %vm150_vm0, %v3503_v8  ;;  %3344 = vmatmul.msk.bf16.gmra.mxu1 %vm150_vm0, %v792_v9  ;;  %v766_v8 = vunpack.c.l.b16 %v466_v61  ;;  %v3772_v9 = vld [vmem:[%s5063_s0 + $0x4] sm:$0xf]  ;;  %v490_v61 = vsel %vm3657_vm3, %v3779_v14, %v3764_v3  ;;  %v2461_v2 = vsel %vm3827_vm12, %v2459_v51, %v2460_v52  ;;  %v1056_v3 = vld [vmem:[%s5063_s0 + $0x10] sm:$0xf]  ;;  %v1643_v6 = vshll.u32 %v1563_v58, 16 }
  0x2a   :  { %v1153_v21 = vrot.slane %v3772_v9, 5  ;;  %v499_v4 = vrot.slane %v498_v55, 4  ;;  %v513_v10 = vrot.slane %v511_v57, 5  ;;  %v2571_v18 = vunpack.c.l.b16 %v2458_v54  ;;  %v1567_v55 = vld [vmem:[%s5063_s0 + $0x1c] sm:$0xf] }
  0x2b   :  { %v794_v30 = vpack.c.b16 %v766_v8, %v765_v7  ;;  %v1649_v7 = vshrl.u32 %v1564_v59, 16  ;;  %v767_v8 = vunpack.c.l.b16 %v480_v60  ;;  %v2572_v19 = vunpack.c.l.b16 %v2461_v2 }
  0x2c   :  { %3332 = vmatmul.msk.bf16.gmra.mxu3 %vm150_vm0, %v3508_v11  ;;  %3321 = vmatmul.msk.bf16.gmra.mxu0 %vm150_vm0, %v3497_v12  ;;  %v1634_v11 = vshll.u32 %v1562_v0, 16  ;;  %v336_v12 = vld [vmem:[%s5063_s0 + $0x40] sm:$0xf]  ;;  %v1154_v62 = vsel %vm3810_vm10, %v3359_v31, %v1153_v21  ;;  %v1662_v31 = vshll.u32 %v1565_v16, 16  ;;  %v3360_v33 = vrot.slane %v1055_v20, 9 }
  0x2d   :  { %v501_v23 = vshll.u32 %v336_v12, 16  ;;  %v505_v24 = vshrl.u32 %v336_v12, 16  ;;  %v768_v12 = vunpack.c.l.b16 %v490_v61  ;;  %v1267_v13 = vunpack.c.l.b16 %v1154_v62 }
  0x2e   :  { %v1636_v28 = vrot.slane %v1634_v11, 6  ;;  %v1652_v11 = vshll.u32 %v1564_v59, 16  ;;  %v1664_v51 = vrot.slane %v1662_v31, 6  ;;  %v2464_v52 = vrot.slane %v2360_v34, 6  ;;  %v1058_v34 = vld [vmem:[%s5063_s0 + $0x18] sm:$0xe] }
  0x2f   :  { %v3806_v40 = vrot.slane %v501_v23, 5  ;;  %v507_v41 = vrot.slane %v505_v24, 4  ;;  %v1057_v23 = vld [vmem:[%s5063_s0 + $0x14] sm:$0x1]  ;;  %v1642_v24 = vrot.slane %v1640_v5, 5  ;;  %v1677_v2 = vshrl.u32 %v1567_v55, 16 }
  0x30   :  { %vm3142_vm13 = vcmask 1041409   ;;  %vm3144_vm14 = vcmask 1042434   ;;  %vm3146_vm15 = vcmask 1043459   ;;  %vm3148_vm1 = vcmask 1044484  }
  0x31   :  { %v508_v56 = vor.u32 %v507_v41, %v3806_v40  ;;  %v2603_v41 = vpack.c.b16 %v2572_v19, %v2571_v18  ;;  %v1059_v18 = vld [vmem:[%s5063_s0 + $0x1c] sm:$0xf]  ;;  %v1679_v19 = vrot.slane %v1677_v2, 5  ;;  %vm3150_vm2 = vcmask 1045509  }
  0x33   :  { %v509_v9 = vrot.slane %v508_v56, 4  ;;  %v2361_v56 = vld [vmem:[%s5063_s0 + $0x14] sm:$0x3] }
  0x39   :  { %3328 = vmatmul.msk.bf16.gmra.mxu2 %vm150_vm0, %v3504_v43  ;;  %3345 = vmatmul.msk.bf16.gmra.mxu1 %vm150_vm0, %v793_v44  ;;  %v1155_v43 = vrot.slane %v1153_v21, 4  ;;  %v1156_v44 = vrot.slane %v1054_v26, 5  ;;  %v1160_v21 = vrot.slane %v1056_v3, 5  ;;  %v1651_v26 = vrot.slane %v1649_v7, 5 }
  0x3a   :  { %v2467_v7 = vrot.slane %v2361_v56, 6 }
  0x3b   :  { %v1157_v63 = vsel %vm3810_vm10, %v1155_v43, %v1156_v44  ;;  %v1162_v37 = vrot.slane %v1160_v21, 4  ;;  %v1161_v61 = vsel %vm3810_vm10, %v3360_v33, %v1160_v21 }
  0x3c   :  { %3333 = vmatmul.msk.bf16.gmra.mxu3 %vm150_vm0, %v3509_v45  ;;  %3322 = vmatmul.msk.bf16.gmra.mxu0 %vm150_vm0, %v3498_v46  ;;  %v1619_v45 = vrot.slane %v1618_v22, 4  ;;  %v1637_v46 = vor.u32 %v1636_v28, %v1633_v27  ;;  %v1268_v14 = vunpack.c.l.b16 %v1157_v63  ;;  %v504_v22 = vsel %vm3657_vm3, %v499_v4, %v3806_v40  ;;  %v339_v40 = vld [vmem:[%s5063_s0 + $0x4c] sm:$0xf] }
  0x3d   :  { %v514_v27 = vsel %vm3657_vm3, %v509_v9, %v513_v10  ;;  %v1654_v28 = vrot.slane %v1652_v11, 6  ;;  %v3886_v43 = vunpack.c.l.b16 %v504_v22  ;;  %v525_v59 = vshll.u32 %v339_v40, 16 }
  0x3e   :  { %v1628_v0 = vsel %vm3819_vm11, %v1619_v45, %v1627_v32  ;;  %v1638_v1 = vsel %vm3819_vm11, %v1629_v49, %v1637_v46  ;;  %v795_v32 = vpack.c.b16 %v768_v12, %v767_v8  ;;  %v1299_v35 = vpack.c.b16 %v1268_v14, %v1267_v13  ;;  %v2359_v46 = vld [vmem:[%s5063_s0 + $0xc] sm:$0xc]  ;;  %v1568_v8 = vld [vmem:[%s5063_s0 + $0x20] sm:$0x3] }
  0x3f   :  { %v2063_v15 = vunpack.c.l.b16 %v1628_v0  ;;  %v2064_v17 = vunpack.c.l.b16 %v1638_v1  ;;  %v3888_v44 = vunpack.c.l.b16 %v514_v27  ;;  %v1655_v49 = vor.u32 %v1654_v28, %v1651_v26  ;;  %v2363_v26 = vld [vmem:[%s5063_s0 + $0x1c] sm:$0xf] }
  0x40   :  { %v529_v60 = vshrl.u32 %v339_v40, 16  ;;  %v1668_v63 = vshrl.u32 %v1566_v47, 16  ;;  %v1671_v0 = vshll.u32 %v1566_v47, 16  ;;  %v3424_v54 = vrot.slane %v2359_v46, 10 }
  0x41   :  { %v2095_v36 = vpack.c.b16 %v2064_v17, %v2063_v15  ;;  %v1680_v4 = vshll.u32 %v1567_v55, 16  ;;  %v1657_v3 = vrot.slane %v1655_v49, 4  ;;  %v3913_v11 = vrot.slane %v525_v59, 5  ;;  %v340_v15 = vld [vmem:[%s5063_s0 + $0x50] sm:$0x1] }
  0x42   :  { %v531_v12 = vrot.slane %v529_v60, 4  ;;  %v1269_v13 = vunpack.c.l.b16 %v1161_v61  ;;  %v1673_v17 = vrot.slane %v1671_v0, 6  ;;  %v1687_v21 = vshrl.u32 %v1568_v8, 16  ;;  %v341_v0 = vld [vmem:[%s5063_s0 + $0x54] sm:$0xf] }
  0x43   :  { %v1682_v20 = vrot.slane %v1680_v4, 6  ;;  %v1690_v22 = vshll.u32 %v1568_v8, 16  ;;  %v535_v31 = vshll.u32 %v340_v15, 16  ;;  %v3361_v55 = vrot.slane %v1058_v34, 9 }
  0x45   :  { %v1692_v40 = vrot.slane %v1690_v22, 6 }
  0x49   :  { %3329 = vmatmul.msk.bf16.gmra.mxu2 %vm150_vm0, %v3505_v25  ;;  %3346 = vmatmul.msk.bf16.gmra.mxu1 %vm150_vm0, %v794_v30  ;;  %v1645_v25 = vrot.slane %v1643_v6, 6  ;;  %v1659_v30 = vshrl.u32 %v1565_v16, 16  ;;  %v2466_v6 = vrot.slane %v2464_v52, 4  ;;  %v1670_v16 = vrot.slane %v1668_v63, 5 }
  0x4b   :  { %v1646_v45 = vor.u32 %v1645_v25, %v1642_v24  ;;  %v1661_v50 = vrot.slane %v1659_v30, 5  ;;  %v2465_v24 = vsel %vm3827_vm12, %v3424_v54, %v2464_v52  ;;  %v2468_v25 = vsel %vm3827_vm12, %v2466_v6, %v2467_v7  ;;  %v1569_v6 = vld [vmem:[%s5063_s0 + $0x24] sm:$0xe] }
  0x4c   :  { %3334 = vmatmul.msk.bf16.gmra.mxu3 %vm150_vm0, %v3510_v38  ;;  %3323 = vmatmul.msk.bf16.gmra.mxu0 %vm150_vm0, %v3499_v39  ;;  %v1163_v38 = vrot.slane %v1057_v23, 5  ;;  %v338_v39 = vld [vmem:[%s5063_s0 + $0x48] sm:$0xf]  ;;  %v532_v30 = vor.u32 %v531_v12, %v3913_v11  ;;  %v2573_v46 = vunpack.c.l.b16 %v2465_v24  ;;  %v2574_v47 = vunpack.c.l.b16 %v2468_v25 }
  0x4d   :  { %v516_v57 = vshrl.u32 %v338_v39, 16  ;;  %v519_v58 = vshll.u32 %v338_v39, 16  ;;  %v1647_v1 = vrot.slane %v1646_v45, 4  ;;  %v1665_v5 = vor.u32 %v1664_v51, %v1661_v50 }
  0x4e   :  { %v1164_v62 = vsel %vm3810_vm10, %v1162_v37, %v1163_v38  ;;  %v1674_v37 = vor.u32 %v1673_v17, %v1670_v16  ;;  %v1683_v38 = vor.u32 %v1682_v20, %v1679_v19  ;;  %v1689_v39 = vrot.slane %v1687_v21, 5 }
  0x4f   :  { %v518_v9 = vrot.slane %v516_v57, 4  ;;  %v521_v10 = vrot.slane %v519_v58, 5  ;;  %v1270_v14 = vunpack.c.l.b16 %v1164_v62  ;;  %v1656_v23 = vsel %vm3819_vm11, %v1647_v1, %v1655_v49  ;;  %v2364_v49 = vld [vmem:[%s5063_s0 + $0x20] sm:$0x3] }
  0x50   :  { %v1666_v27 = vsel %vm3819_vm11, %v1657_v3, %v1665_v5  ;;  %v2471_v45 = vrot.slane %v2363_v26, 6  ;;  %v533_v51 = vrot.slane %v532_v30, 4  ;;  %v537_v52 = vrot.slane %v535_v31, 5  ;;  %v342_v5 = vld [vmem:[%s5063_s0 + $0x58] sm:$0xf] }
  0x51   :  { %v522_v28 = vor.u32 %v521_v10, %v518_v9  ;;  %v1300_v33 = vpack.c.b16 %v1270_v14, %v1269_v13  ;;  %v1675_v58 = vrot.slane %v1674_v37, 4  ;;  %v1685_v60 = vrot.slane %v1683_v38, 4 }
  0x52   :  { %v1693_v61 = vor.u32 %v1692_v40, %v1689_v39  ;;  %v2473_v62 = vrot.slane %v2471_v45, 4  ;;  %v2474_v63 = vrot.slane %v2364_v49, 6  ;;  %v2604_v54 = vpack.c.b16 %v2574_v47, %v2573_v46  ;;  %v2366_v46 = vld [vmem:[%s5063_s0 + $0x28] sm:$0xf] }
  0x53   :  { %v523_v50 = vrot.slane %v522_v28, 4  ;;  %v538_v4 = vsel %vm3657_vm3, %v533_v51, %v537_v52  ;;  %v1684_v8 = vsel %vm3819_vm11, %v1675_v58, %v1683_v38  ;;  %v540_v9 = vshrl.u32 %v341_v0, 16  ;;  %v344_v51 = vld [vmem:[%s5063_s0 + $0x60] sm:$0xf]  ;;  %v1063_v58 = vld [vmem:[%s5063_s0 + $0x2c] sm:$0x1] }
  0x54   :  { %v543_v10 = vshll.u32 %v341_v0, 16  ;;  %v1694_v12 = vsel %vm3819_vm11, %v1685_v60, %v1693_v61  ;;  %v2475_v14 = vsel %vm3827_vm12, %v2473_v62, %v2474_v63  ;;  %v549_v15 = vshll.u32 %v342_v5, 16  ;;  %v345_v60 = vld [vmem:[%s5063_s0 + $0x64] sm:$0xf] }
  0x55   :  { %v528_v2 = vsel %vm3657_vm3, %v523_v50, %v3913_v11  ;;  %v1570_v11 = vld [vmem:[%s5063_s0 + $0x28] sm:$0xf]  ;;  %v553_v16 = vshrl.u32 %v342_v5, 16  ;;  %v1696_v17 = vshrl.u32 %v1569_v6, 16  ;;  %v772_v20 = vunpack.c.l.b16 %v538_v4  ;;  %v2365_v0 = vld [vmem:[%s5063_s0 + $0x24] sm:$0xc] }
  0x56   :  { %v771_v19 = vunpack.c.l.b16 %v528_v2  ;;  %v1705_v21 = vshrl.u32 %v1570_v11, 16  ;;  %v1708_v22 = vshll.u32 %v1570_v11, 16  ;;  %v542_v25 = vrot.slane %v540_v9, 4  ;;  %v2367_v4 = vld [vmem:[%s5063_s0 + $0x2c] sm:$0x3] }
  0x57   :  { %v545_v26 = vrot.slane %v543_v10, 5  ;;  %v2067_v28 = vunpack.c.l.b16 %v1684_v8  ;;  %v2068_v30 = vunpack.c.l.b16 %v1694_v12  ;;  %v3986_v34 = vrot.slane %v549_v15, 5 }
  0x58   :  { %v1698_v37 = vrot.slane %v1696_v17, 5  ;;  %v1707_v39 = vrot.slane %v1705_v21, 5  ;;  %v1710_v40 = vrot.slane %v1708_v22, 6  ;;  %v797_v47 = vpack.c.b16 %v772_v20, %v771_v19  ;;  %v346_v21 = vld [vmem:[%s5063_s0 + $0x68] sm:$0x1] }
  0x59   :  { %3347 = vmatmul.msk.bf16.gmra.mxu1 %vm150_vm0, %v795_v32  ;;  %3383 = vmatmul.msk.bf16.vlgmr.msrb.gmra.mxu2 %vm150_vm0, %v1299_v35  ;;  %v796_v32 = vpack.c.b16 %v3888_v44, %v3886_v43  ;;  %v1060_v35 = vld [vmem:[%s5063_s0 + $0x20] sm:$0x1]  ;;  %v2065_v43 = vunpack.c.l.b16 %v1656_v23  ;;  %v2066_v44 = vunpack.c.l.b16 %v1666_v27  ;;  %v1571_v27 = vld [vmem:[%s5063_s0 + $0x2c] sm:$0x3]  ;;  %v2097_v52 = vpack.c.b16 %v2068_v30, %v2067_v28  ;;  %v1065_v28 = vld [vmem:[%s5063_s0 + $0x34] sm:$0xf] }
  0x5a   :  { %v1170_v57 = vrot.slane %v1060_v35, 5  ;;  %v555_v35 = vrot.slane %v553_v16, 4  ;;  %v1711_v61 = vor.u32 %v1710_v40, %v1707_v39  ;;  %v567_v5 = vshll.u32 %v344_v51, 16 }
  0x5b   :  { %v2096_v1 = vpack.c.b16 %v2066_v44, %v2065_v43  ;;  %v546_v43 = vor.u32 %v545_v26, %v542_v25  ;;  %v573_v8 = vshll.u32 %v345_v60, 16  ;;  %v577_v9 = vshrl.u32 %v345_v60, 16 }
  0x5c   :  { %3407 = vmatmul.msk.bf16.vlgmr.msrb.gmra.mxu3 %vm150_vm0, %v2095_v36  ;;  %3447 = vmatmul.msk.bf16.vlgmr.msrb.gmra.mxu0 %vm150_vm0, %v2603_v41  ;;  %v1167_v36 = vrot.slane %v1059_v18, 5  ;;  %v2362_v41 = vld [vmem:[%s5063_s0 + $0x18] sm:$0xc]  ;;  %v1699_v18 = vshll.u32 %v1569_v6, 16  ;;  %v1177_v11 = vrot.slane %v1063_v58, 5  ;;  %v2481_v17 = vrot.slane %v2367_v4, 6 }
  0x5d   :  { %v3425_v59 = vrot.slane %v2362_v41, 10  ;;  %v1715_v41 = vshrl.u32 %v1571_v27, 16  ;;  %v569_v19 = vrot.slane %v567_v5, 5  ;;  %v4021_v22 = vrot.slane %v573_v8, 5 }
  0x5e   :  { %v1169_v56 = vrot.slane %v1167_v36, 4  ;;  %v1168_v3 = vsel %vm3810_vm10, %v3361_v55, %v1167_v36  ;;  %v1062_v36 = vld [vmem:[%s5063_s0 + $0x28] sm:$0xf]  ;;  %v1701_v38 = vrot.slane %v1699_v18, 6 }
  0x5f   :  { %v2472_v13 = vsel %vm3827_vm12, %v3425_v59, %v2471_v45  ;;  %v1271_v23 = vunpack.c.l.b16 %v1168_v3  ;;  %v1718_v45 = vshll.u32 %v1571_v27, 16  ;;  %v1174_v50 = vrot.slane %v1062_v36, 5 }
  0x60   :  { %v1171_v7 = vsel %vm3810_vm10, %v1169_v56, %v1170_v57  ;;  %v2575_v31 = vunpack.c.l.b16 %v2472_v13  ;;  %v556_v56 = vor.u32 %v555_v35, %v3986_v34  ;;  %v1061_v57 = vld [vmem:[%s5063_s0 + $0x24] sm:$0xe]  ;;  %v1702_v59 = vor.u32 %v1701_v38, %v1698_v37 }
  0x61   :  { %v1272_v24 = vunpack.c.l.b16 %v1171_v7  ;;  %v1717_v62 = vrot.slane %v1715_v41, 5  ;;  %v1720_v63 = vrot.slane %v1718_v45, 6  ;;  %v564_v3 = vshrl.u32 %v344_v51, 16 }
  0x62   :  { %v3362_v6 = vrot.slane %v1061_v57, 9  ;;  %v1176_v7 = vrot.slane %v1174_v50, 4  ;;  %v557_v10 = vrot.slane %v556_v56, 4  ;;  %v1703_v12 = vrot.slane %v1702_v59, 4  ;;  %v1574_v57 = vld [vmem:[%s5063_s0 + $0x38] sm:$0x3] }
  0x63   :  { %v1301_v49 = vpack.c.b16 %v1272_v24, %v1271_v23  ;;  %v3426_v13 = vrot.slane %v2365_v0, 10  ;;  %v1721_v15 = vor.u32 %v1720_v63, %v1717_v62  ;;  %v566_v18 = vrot.slane %v564_v3, 4  ;;  %v1572_v24 = vld [vmem:[%s5063_s0 + $0x30] sm:$0xe]  ;;  %v347_v62 = vld [vmem:[%s5063_s0 + $0x6c] sm:$0xf] }
  0x64   :  { %v579_v23 = vrot.slane %v577_v9, 4  ;;  %v1175_v26 = vsel %vm3810_vm10, %v3362_v6, %v1174_v50  ;;  %v1178_v27 = vsel %vm3810_vm10, %v1176_v7, %v1177_v11  ;;  %v1712_v30 = vsel %vm3819_vm11, %v1703_v12, %v1711_v61 }
  0x65   :  { %v570_v35 = vor.u32 %v569_v19, %v566_v18  ;;  %v583_v36 = vshll.u32 %v346_v21, 16  ;;  %v1724_v37 = vshrl.u32 %v1572_v24, 16  ;;  %v1727_v38 = vshll.u32 %v1572_v24, 16  ;;  %v2368_v19 = vld [vmem:[%s5063_s0 + $0x30] sm:$0xc] }
  0x66   :  { %v1273_v40 = vunpack.c.l.b16 %v1175_v26  ;;  %v580_v41 = vor.u32 %v579_v23, %v4021_v22  ;;  %v1181_v45 = vrot.slane %v1065_v28, 5  ;;  %v2069_v51 = vunpack.c.l.b16 %v1712_v30 }
  0x67   :  { %v571_v58 = vrot.slane %v570_v35, 4  ;;  %v585_v59 = vrot.slane %v583_v36, 5  ;;  %v1726_v60 = vrot.slane %v1724_v37, 5  ;;  %v1743_v5 = vshrl.u32 %v1574_v57, 16 }
  0x68   :  { %v581_v63 = vrot.slane %v580_v41, 4  ;;  %v1746_v6 = vshll.u32 %v1574_v57, 16  ;;  %v588_v8 = vshrl.u32 %v347_v62, 16  ;;  %v591_v9 = vshll.u32 %v347_v62, 16 }
  0x69   :  { %3348 = vmatmul.msk.bf16.gmra.mxu1 %vm150_vm0, %v796_v32  ;;  %3384 = vmatmul.msk.bf16.gmra.mxu2 %vm150_vm0, %v1300_v33  ;;  %v2576_v32 = vunpack.c.l.b16 %v2475_v14  ;;  %v343_v33 = vld [vmem:[%s5063_s0 + $0x5c] sm:$0x1]  ;;  %v1713_v14 = vrot.slane %v1711_v61, 4  ;;  %v1729_v61 = vrot.slane %v1727_v38, 6  ;;  %v1745_v24 = vrot.slane %v1743_v5, 5 }
  0x6a   :  { %v559_v44 = vshll.u32 %v343_v33, 16  ;;  %v593_v28 = vrot.slane %v591_v9, 5  ;;  %v1575_v38 = vld [vmem:[%s5063_s0 + $0x3c] sm:$0xe] }
  0x6b   :  { %v2605_v55 = vpack.c.b16 %v2576_v32, %v2575_v31  ;;  %v1722_v31 = vsel %vm3819_vm11, %v1713_v14, %v1721_v15  ;;  %v348_v14 = vld [vmem:[%s5063_s0 + $0x70] sm:$0xf]  ;;  %v576_v15 = vsel %vm3657_vm3, %v571_v58, %v4021_v22  ;;  %v1730_v18 = vor.u32 %v1729_v61, %v1726_v60  ;;  %v1577_v61 = vld [vmem:[%s5063_s0 + $0x44] sm:$0x3]  ;;  %v1067_v9 = vld [vmem:[%s5063_s0 + $0x3c] sm:$0xe] }
  0x6c   :  { %3408 = vmatmul.msk.bf16.gmra.mxu3 %vm150_vm0, %v2096_v1  ;;  %3448 = vmatmul.msk.bf16.gmra.mxu0 %vm150_vm0, %v2604_v54  ;;  %v2478_v1 = vrot.slane %v2366_v46, 6  ;;  %v547_v54 = vrot.slane %v546_v43, 4  ;;  %v561_v2 = vrot.slane %v559_v44, 5  ;;  %v1274_v44 = vunpack.c.l.b16 %v1178_v27  ;;  %v1064_v46 = vld [vmem:[%s5063_s0 + $0x30] sm:$0xe] }
  0x6d   :  { %v3363_v0 = vrot.slane %v1064_v46, 9  ;;  %v590_v27 = vrot.slane %v588_v8, 4  ;;  %v597_v30 = vshll.u32 %v348_v14, 16  ;;  %v4088_v35 = vunpack.c.l.b16 %v576_v15 }
  0x6e   :  { %v2480_v16 = vrot.slane %v2478_v1, 4  ;;  %v552_v20 = vsel %vm3657_vm3, %v547_v54, %v3986_v34  ;;  %v562_v25 = vsel %vm3657_vm3, %v557_v10, %v561_v2  ;;  %v2479_v32 = vsel %vm3827_vm12, %v3426_v13, %v2478_v1  ;;  %v1573_v34 = vld [vmem:[%s5063_s0 + $0x34] sm:$0xf] }
  0x6f   :  { %v773_v39 = vunpack.c.l.b16 %v552_v20  ;;  %v774_v43 = vunpack.c.l.b16 %v562_v25  ;;  %v1736_v50 = vshll.u32 %v1573_v34, 16  ;;  %v1183_v1 = vrot.slane %v1181_v45, 4  ;;  %v2369_v2 = vld [vmem:[%s5063_s0 + $0x34] sm:$0xf]  ;;  %v2370_v20 = vld [vmem:[%s5063_s0 + $0x38] sm:$0x3] }
  0x70   :  { %v2482_v33 = vsel %vm3827_vm12, %v2480_v16, %v2481_v17  ;;  %v1302_v10 = vpack.c.b16 %v1274_v44, %v1273_v40  ;;  %v2485_v13 = vrot.slane %v2369_v2, 6  ;;  %v586_v16 = vsel %vm3657_vm3, %v581_v63, %v585_v59  ;;  %v349_v44 = vld [vmem:[%s5063_s0 + $0x74] sm:$0x1] }
  0x71   :  { %v2578_v56 = vunpack.c.l.b16 %v2482_v33  ;;  %v1738_v3 = vrot.slane %v1736_v50, 6  ;;  %v798_v7 = vpack.c.b16 %v774_v43, %v773_v39  ;;  %v1182_v17 = vsel %vm3810_vm10, %v3363_v0, %v1181_v45  ;;  %v1576_v43 = vld [vmem:[%s5063_s0 + $0x40] sm:$0xf] }
  0x72   :  { %v1748_v25 = vrot.slane %v1746_v6, 6  ;;  %v2487_v33 = vrot.slane %v2485_v13, 4  ;;  %v4090_v36 = vunpack.c.l.b16 %v586_v16  ;;  %v1731_v37 = vrot.slane %v1730_v18, 4  ;;  %v4108_v50 = vld [vmem:[%s5063_s0 + $0x40] sm:$0xf] }
  0x73   :  { %v1275_v39 = vunpack.c.l.b16 %v1182_v17  ;;  %v594_v46 = vor.u32 %v593_v28, %v590_v27  ;;  %v1755_v57 = vshll.u32 %v1575_v38, 16  ;;  %v1761_v62 = vshrl.u32 %v1576_v43, 16  ;;  %v351_v27 = vld [vmem:[%s5063_s0 + $0x7c] sm:$0xf] }
  0x74   :  { %v1749_v45 = vor.u32 %v1748_v25, %v1745_v24  ;;  %v799_v59 = vpack.c.b16 %v4090_v36, %v4088_v35  ;;  %v1764_v63 = vshll.u32 %v1576_v43, 16  ;;  %v607_v2 = vshll.u32 %v349_v44, 16 }
  0x75   :  { %v1771_v15 = vshrl.u32 %v1577_v61, 16  ;;  %v1763_v17 = vrot.slane %v1761_v62, 5 }
  0x76   :  { %v1766_v18 = vrot.slane %v1764_v63, 6 }
  0x78   :  { %v4161_v43 = vor.u32 %v1766_v18, %v1763_v17 }
  0x79   :  { %3349 = vmatmul.msk.bf16.gmra.mxu1 %vm150_vm0, %v797_v47  ;;  %3385 = vmatmul.msk.bf16.gmra.mxu2 %vm150_vm0, %v1301_v49  ;;  %v1066_v47 = vld [vmem:[%s5063_s0 + $0x38] sm:$0x1]  ;;  %v1733_v49 = vshrl.u32 %v1573_v34, 16  ;;  %v2488_v34 = vrot.slane %v2370_v20, 6 }
  0x7a   :  { %v1184_v54 = vrot.slane %v1066_v47, 5  ;;  %v4103_v47 = vrot.slane %v597_v30, 5  ;;  %v350_v20 = vld [vmem:[%s5063_s0 + $0x78] sm:$0xf] }
  0x7b   :  { %v1735_v4 = vrot.slane %v1733_v49, 5 }
  0x7c   :  { %3409 = vmatmul.msk.bf16.gmra.mxu3 %vm150_vm0, %v2097_v52  ;;  %3449 = vmatmul.msk.bf16.gmra.mxu0 %vm150_vm0, %v2605_v55  ;;  %v2070_v52 = vunpack.c.l.b16 %v1722_v31  ;;  %v2577_v55 = vunpack.c.l.b16 %v2479_v32  ;;  %v1185_v22 = vsel %vm3810_vm10, %v1183_v1, %v1184_v54  ;;  %v601_v31 = vshrl.u32 %v348_v14, 16 }
  0x7d   :  { %v1739_v23 = vor.u32 %v1738_v3, %v1735_v4  ;;  %v3427_v32 = vrot.slane %v2368_v19, 10  ;;  %v1276_v40 = vunpack.c.l.b16 %v1185_v22  ;;  %v1188_v4 = vrot.slane %v4108_v50, 5 }
  0x7e   :  { %v2098_v11 = vpack.c.b16 %v2070_v52, %v2069_v51  ;;  %v2606_v12 = vpack.c.b16 %v2578_v56, %v2577_v55  ;;  %v603_v49 = vrot.slane %v601_v31, 4  ;;  %v2489_v55 = vsel %vm3827_vm12, %v2487_v33, %v2488_v34  ;;  %v2371_v33 = vld [vmem:[%s5063_s0 + $0x3c] sm:$0xc]  ;;  %v2373_v34 = vld [vmem:[%s5063_s0 + $0x44] sm:$0x3] }
  0x7f   :  { %v1741_v41 = vrot.slane %v1739_v23, 4  ;;  %v2486_v52 = vsel %vm3827_vm12, %v3427_v32, %v2485_v13  ;;  %v1752_v56 = vshrl.u32 %v1575_v38, 16  ;;  %v1740_v60 = vsel %vm3819_vm11, %v1731_v37, %v1739_v23 }
  0x80   :  { %v1303_v1 = vpack.c.b16 %v1276_v40, %v1275_v39  ;;  %v2579_v5 = vunpack.c.l.b16 %v2486_v52  ;;  %v2580_v6 = vunpack.c.l.b16 %v2489_v55  ;;  %v604_v8 = vor.u32 %v603_v49, %v4103_v47 }
  0x81   :  { %v1750_v54 = vsel %vm3819_vm11, %v1741_v41, %v1749_v45  ;;  %v1754_v13 = vrot.slane %v1752_v56, 5  ;;  %v1757_v14 = vrot.slane %v1755_v57, 6  ;;  %v1774_v19 = vshll.u32 %v1577_v61, 16 }
  0x82   :  { %v2072_v16 = vunpack.c.l.b16 %v1750_v54  ;;  %v609_v22 = vrot.slane %v607_v2, 5  ;;  %v3364_v23 = vrot.slane %v1067_v9, 9  ;;  %v1190_v24 = vrot.slane %v1188_v4, 4  ;;  %v1578_v54 = vld [vmem:[%s5063_s0 + $0x48] sm:$0xe] }
  0x83   :  { %v2607_v28 = vpack.c.b16 %v2580_v6, %v2579_v5  ;;  %v605_v31 = vrot.slane %v604_v8, 4  ;;  %v1758_v38 = vor.u32 %v1757_v14, %v1754_v13  ;;  %v1773_v39 = vrot.slane %v1771_v15, 5  ;;  %v352_v9 = vld [vmem:[%s5063_s0 + $0x80] sm:$0x1]  ;;  %v1071_v14 = vld [vmem:[%s5063_s0 + $0x4c] sm:$0xf] }
  0x84   :  { %v612_v40 = vshrl.u32 %v350_v20, 16  ;;  %v615_v41 = vshll.u32 %v350_v20, 16  ;;  %v1776_v44 = vrot.slane %v1774_v19, 6  ;;  %v3428_v52 = vrot.slane %v2371_v33, 10  ;;  %v1580_v15 = vld [vmem:[%s5063_s0 + $0x50] sm:$0x3] }
  0x85   :  { %v2495_v56 = vrot.slane %v2373_v34, 6  ;;  %v610_v61 = vsel %vm3657_vm3, %v605_v31, %v609_v22  ;;  %v1189_v63 = vsel %vm3810_vm10, %v3364_v23, %v1188_v4  ;;  %v1759_v5 = vrot.slane %v1758_v38, 4 }
  0x86   :  { %v4080_v21 = vpop.f32.mrf.mxu1  ;;  %v617_v6 = vrot.slane %v615_v41, 5  ;;  %v1769_v4 = vrot.slane %v4161_v43, 4  ;;  %v1777_v8 = vor.u32 %v1776_v44, %v1773_v39  ;;  %v1277_v13 = vunpack.c.l.b16 %v1189_v63 }
  0x87   :  { %v1768_v20 = vsel %vm3819_vm11, %v1759_v5, %v4161_v43  ;;  %v631_v23 = vshll.u32 %v352_v9, 16  ;;  %v1195_v33 = vrot.slane %v1071_v14, 5  ;;  %v1799_v39 = vshrl.u32 %v1580_v15, 16  ;;  %v1072_v43 = vld [vmem:[%s5063_s0 + $0x50] sm:$0x1] }
  0x88   :  { %v354_v5 = vld [vmem:[%s5063_s0 + $0x88] sm:$0xf] }
  0x89   :  { %v4084_v26 = vpop.f32.mrf.mxu0  ;;  %3350 = vmatmul.msk.bf16.gmra.mxu1 %vm150_vm0, %v798_v7  ;;  %3386 = vmatmul.msk.bf16.gmra.mxu2 %vm150_vm0, %v1302_v10  ;;  %v595_v7 = vrot.slane %v594_v46, 4  ;;  %v2372_v10 = vld [vmem:[%s5063_s0 + $0x40] sm:$0xf]  ;;  %v621_v46 = vshll.u32 %v351_v27, 16  ;;  %v1801_v9 = vrot.slane %v1799_v39, 5  ;;  %v649_v14 = vshrl.u32 %v354_v5, 16 }
  0x8a   :  { %v2492_v25 = vrot.slane %v2372_v10, 6 }
  0x8b   :  { %v600_v30 = vsel %vm3657_vm3, %v595_v7, %v4103_v47  ;;  %v625_v47 = vshrl.u32 %v351_v27, 16  ;;  %v1579_v7 = vld [vmem:[%s5063_s0 + $0x4c] sm:$0xf]  ;;  %v4191_v10 = vrot.slane %v621_v46, 5 }
  0x8c   :  { %3410 = vmatmul.msk.bf16.gmra.mxu3 %vm150_vm0, %v2098_v11  ;;  %3450 = vmatmul.msk.bf16.gmra.mxu0 %vm150_vm0, %v2606_v12  ;;  %v4110_v51 = vpop.f32.mrf.mxu2  ;;  %v2071_v11 = vunpack.c.l.b16 %v1740_v60  ;;  %v1069_v12 = vld [vmem:[%s5063_s0 + $0x44] sm:$0x1]  ;;  %v2494_v55 = vrot.slane %v2492_v25, 4  ;;  %v4170_v62 = vunpack.c.l.b16 %v600_v30  ;;  %v2493_v35 = vsel %vm3827_vm12, %v3428_v52, %v2492_v25 }
  0x8d   :  { %v1191_v32 = vrot.slane %v1069_v12, 5  ;;  %v4199_v12 = vunpack.c.l.b16 %v610_v61  ;;  %v1792_v17 = vshll.u32 %v1579_v7, 16  ;;  %v1778_v25 = vsel %vm3819_vm11, %v1769_v4, %v1777_v8  ;;  %v2374_v4 = vld [vmem:[%s5063_s0 + $0x48] sm:$0xc] }
  0x8e   :  { %v4125_v0 = vpop.f32.mrf.mxu1  ;;  %v2099_v50 = vpack.c.b16 %v2072_v16, %v2071_v11  ;;  %v627_v11 = vrot.slane %v625_v47, 4  ;;  %v2496_v36 = vsel %vm3827_vm12, %v2494_v55, %v2495_v56  ;;  %v1789_v16 = vshrl.u32 %v1579_v7, 16 }
  0x8f   :  { %v4116_v58 = vpop.f32.mrf.mxu3  ;;  %v1192_v2 = vsel %vm3810_vm10, %v1190_v24, %v1191_v32  ;;  %v2581_v27 = vunpack.c.l.b16 %v2493_v35  ;;  %v1070_v32 = vld [vmem:[%s5063_s0 + $0x48] sm:$0xe]  ;;  %v1794_v46 = vrot.slane %v1792_v17, 6  ;;  %v1802_v47 = vshll.u32 %v1580_v15, 16  ;;  %v2376_v35 = vld [vmem:[%s5063_s0 + $0x50] sm:$0x3] }
  0x90   :  { %5077 = vst [vmem:[#allocation6_spill] sm:$0xff] %v4116_v58  ;;  %v1278_v19 = vunpack.c.l.b16 %v1192_v2  ;;  %v628_v30 = vor.u32 %v627_v11, %v4191_v10  ;;  %v1791_v44 = vrot.slane %v1789_v16, 5  ;;  %v633_v55 = vrot.slane %v631_v23, 5  ;;  %v353_v2 = vld [vmem:[%s5063_s0 + $0x84] sm:$0xf] }
  0x91   :  { %v4130_v3 = vpop.f32.mrf.mxu0  ;;  %v2073_v56 = vunpack.c.l.b16 %v1768_v20  ;;  %v2074_v61 = vunpack.c.l.b16 %v1778_v25  ;;  %v1804_v11 = vrot.slane %v1802_v47, 6 }
  0x92   :  { %v629_v63 = vrot.slane %v628_v30, 4  ;;  %v1795_v8 = vor.u32 %v1794_v46, %v1791_v44  ;;  %v651_v44 = vrot.slane %v649_v14, 4  ;;  %v1581_v46 = vld [vmem:[%s5063_s0 + $0x54] sm:$0xe] }
  0x93   :  { %v2100_v16 = vpack.c.b16 %v2074_v61, %v2073_v56  ;;  %v1582_v56 = vld [vmem:[%s5063_s0 + $0x58] sm:$0xf] }
  0x94   :  { %v4157_v37 = vpop.f32.mrf.mxu2 }
  0x96   :  { %v876_v49 = vpop.f32.mrf.mxu1 }
  0x97   :  { %v4159_v45 = vpop.f32.mrf.mxu3  ;;  %v4164_v57 = vadd.f32 %v876_v49, %v4084_v26  ;;  %v614_v26 = vrot.slane %v612_v40, 4  ;;  %v800_v49 = vpack.c.b16 %v4199_v12, %v4170_v62  ;;  %v639_v12 = vshll.u32 %v353_v2, 16 }
  0x98   :  { %5078 = vst [vmem:[#allocation7_spill] sm:$0xff] %v4159_v45 }
  0x99   :  { %v4166_v60 = vpop.f32.mrf.mxu0  ;;  %3351 = vmatmul.msk.bf16.gmra.mxu1 %vm150_vm0, %v799_v59  ;;  %3387 = vmatmul.msk.bf16.gmra.mxu2 %vm150_vm0, %v1303_v1  ;;  %v1780_v59 = vshrl.u32 %v1578_v54, 16  ;;  %v1783_v1 = vshll.u32 %v1578_v54, 16  ;;  %v618_v22 = vor.u32 %v617_v6, %v614_v26  ;;  %v3365_v54 = vrot.slane %v1070_v32, 9 }
  0x9a   :  { %v1197_v26 = vrot.slane %v1195_v33, 4  ;;  %v1198_v6 = vrot.slane %v1072_v43, 5  ;;  %v1805_v32 = vor.u32 %v1804_v11, %v1801_v9  ;;  %v641_v39 = vrot.slane %v639_v12, 5 }
  0x9b   :  { %v1782_v34 = vrot.slane %v1780_v59, 5  ;;  %v1785_v38 = vrot.slane %v1783_v1, 6  ;;  %v619_v52 = vrot.slane %v618_v22, 4  ;;  %v636_v1 = vshrl.u32 %v353_v2, 16  ;;  %v1073_v2 = vld [vmem:[%s5063_s0 + $0x54] sm:$0xe] }
  0x9c   :  { %3411 = vmatmul.msk.bf16.gmra.mxu3 %vm150_vm0, %v2099_v50  ;;  %3451 = vmatmul.msk.bf16.gmra.mxu0 %vm150_vm0, %v2607_v28  ;;  %v4207_v18 = vpop.f32.mrf.mxu2  ;;  %v2582_v28 = vunpack.c.l.b16 %v2496_v36  ;;  %v1304_v50 = vpack.c.b16 %v1278_v19, %v1277_v13  ;;  %v645_v13 = vshll.u32 %v354_v5, 16  ;;  %v634_v19 = vsel %vm3657_vm3, %v629_v63, %v633_v55 }
  0x9d   :  { %v1786_v7 = vor.u32 %v1785_v38, %v1782_v34  ;;  %v624_v17 = vsel %vm3657_vm3, %v619_v52, %v4191_v10  ;;  %v4256_v20 = vsel %vm3810_vm10, %v3365_v54, %v1195_v33  ;;  %v4260_v23 = vsel %vm3810_vm10, %v1197_v26, %v1198_v6  ;;  %v355_v33 = vld [vmem:[%s5063_s0 + $0x8c] sm:$0x1]  ;;  %v1074_v52 = vld [vmem:[%s5063_s0 + $0x58] sm:$0xf] }
  0x9e   :  { %v878_v31 = vpop.f32.mrf.mxu1  ;;  %v2608_v62 = vpack.c.b16 %v2582_v28, %v2581_v27  ;;  %v3429_v27 = vrot.slane %v2374_v4, 10  ;;  %v2502_v28 = vrot.slane %v2376_v35, 6  ;;  %v1797_v10 = vrot.slane %v1795_v8, 4 }
  0x9f   :  { %v4212_v24 = vpop.f32.mrf.mxu3  ;;  %v4221_v40 = vadd.f32 %v878_v31, %v4130_v3  ;;  %v2375_v3 = vld [vmem:[%s5063_s0 + $0x4c] sm:$0xf]  ;;  %v1787_v25 = vrot.slane %v1786_v7, 4  ;;  %v638_v38 = vrot.slane %v636_v1, 4  ;;  %v4270_v43 = vrot.slane %v645_v13, 5 }
  0xa0   :  { %5079 = vst [vmem:[#allocation8_spill] sm:$0xff] %v4212_v24  ;;  %v2499_v36 = vrot.slane %v2375_v3, 6  ;;  %v4279_v47 = vunpack.c.l.b16 %v634_v19  ;;  %v1279_v55 = vunpack.c.l.b16 %v4256_v20  ;;  %v1280_v3 = vunpack.c.l.b16 %v4260_v23  ;;  %v1075_v7 = vld [vmem:[%s5063_s0 + $0x5c] sm:$0x1] }
  0xa1   :  { %v4223_v41 = vpop.f32.mrf.mxu0  ;;  %v1806_v61 = vsel %vm3819_vm11, %v1797_v10, %v1805_v32  ;;  %v1808_v5 = vshrl.u32 %v1581_v46, 16  ;;  %v642_v26 = vor.u32 %v641_v39, %v638_v38  ;;  %v652_v6 = vor.u32 %v651_v44, %v4270_v43  ;;  %v1583_v19 = vld [vmem:[%s5063_s0 + $0x5c] sm:$0x3]  ;;  %v357_v10 = vld [vmem:[%s5063_s0 + $0x94] sm:$0xf] }
  0xa2   :  { %v2501_v34 = vrot.slane %v2499_v36, 4  ;;  %v2500_v63 = vsel %vm3827_vm12, %v3429_v27, %v2499_v36  ;;  %v1202_v4 = vrot.slane %v1074_v52, 5  ;;  %v1817_v36 = vshrl.u32 %v1582_v56, 16  ;;  %v4329_v52 = vld [vmem:[%s5063_s0 + $0x58] sm:$0xf] }
  0xa3   :  { %v1820_v1 = vshll.u32 %v1582_v56, 16  ;;  %v2076_v13 = vunpack.c.l.b16 %v1806_v61  ;;  %v2583_v14 = vunpack.c.l.b16 %v2500_v63  ;;  %v1810_v27 = vrot.slane %v1808_v5, 5 }
  0xa4   :  { %v4245_v59 = vpop.f32.mrf.mxu2  ;;  %v2503_v54 = vsel %vm3827_vm12, %v2501_v34, %v2502_v28  ;;  %v356_v28 = vld [vmem:[%s5063_s0 + $0x90] sm:$0xf]  ;;  %v643_v32 = vrot.slane %v642_v26, 4  ;;  %v653_v34 = vrot.slane %v652_v6, 4  ;;  %v1819_v39 = vrot.slane %v1817_v36, 5 }
  0xa5   :  { %v2584_v23 = vunpack.c.l.b16 %v2503_v54  ;;  %v1827_v44 = vshrl.u32 %v1583_v19, 16  ;;  %v669_v56 = vshll.u32 %v357_v10, 16  ;;  %v673_v61 = vshrl.u32 %v357_v10, 16 }
  0xa6   :  { %v881_v22 = vpop.f32.mrf.mxu1  ;;  %v1305_v63 = vpack.c.b16 %v1280_v3, %v1279_v55  ;;  %v648_v6 = vsel %vm3657_vm3, %v643_v32, %v4270_v43  ;;  %v2377_v3 = vld [vmem:[%s5063_s0 + $0x54] sm:$0xc] }
  0xa7   :  { %v4247_v15 = vpop.f32.mrf.mxu3  ;;  %v4263_v30 = vadd.f32 %v881_v22, %v4166_v60  ;;  %v4277_v60 = vunpack.c.l.b16 %v624_v17  ;;  %v3366_v17 = vrot.slane %v1073_v2, 9  ;;  %v2609_v2 = vpack.c.b16 %v2584_v23, %v2583_v14 }
  0xa8   :  { %5080 = vst [vmem:[#allocation9_spill] sm:$0xff] %v4247_v15  ;;  %v1829_v43 = vrot.slane %v1827_v44, 5  ;;  %v4363_v23 = vrot.slane %v669_v56, 5  ;;  %v4370_v10 = vunpack.c.l.b16 %v648_v6  ;;  %v1077_v44 = vld [vmem:[%s5063_s0 + $0x64] sm:$0xf] }
  0xa9   :  { %v4265_v31 = vpop.f32.mrf.mxu0  ;;  %3352 = vmatmul.msk.bf16.gmra.mxu1 %vm150_vm0, %v800_v49  ;;  %3388 = vmatmul.msk.bf16.gmra.mxu2 %vm150_vm0, %v1304_v50  ;;  %v1796_v49 = vsel %vm3819_vm11, %v1787_v25, %v1795_v8  ;;  %v655_v50 = vshll.u32 %v355_v33, 16  ;;  %v1811_v8 = vshll.u32 %v1581_v46, 16  ;;  %v801_v11 = vpack.c.b16 %v4279_v47, %v4277_v60  ;;  %v2385_v15 = vld [vmem:[%s5063_s0 + $0x74] sm:$0x3] }
  0xaa   :  { %v2075_v35 = vunpack.c.l.b16 %v1796_v49  ;;  %v1205_v25 = vrot.slane %v1075_v7, 5  ;;  %v1204_v33 = vrot.slane %v1202_v4, 4  ;;  %v1830_v46 = vshll.u32 %v1583_v19, 16 }
  0xab   :  { %v1813_v38 = vrot.slane %v1811_v8, 6  ;;  %v660_v49 = vshrl.u32 %v356_v28, 16  ;;  %v4333_v5 = vsel %vm3810_vm10, %v3366_v17, %v1202_v4  ;;  %v1584_v4 = vld [vmem:[%s5063_s0 + $0x60] sm:$0xe]  ;;  %v1209_v6 = vrot.slane %v1077_v44, 5 }
  0xac   :  { %3412 = vmatmul.msk.bf16.gmra.mxu3 %vm150_vm0, %v2100_v16  ;;  %3452 = vmatmul.msk.bf16.gmra.mxu0 %vm150_vm0, %v2608_v62  ;;  %v4302_v62 = vpop.f32.mrf.mxu2  ;;  %v657_v16 = vrot.slane %v655_v50, 5  ;;  %v663_v50 = vshll.u32 %v356_v28, 16  ;;  %v2101_v54 = vpack.c.b16 %v2076_v13, %v2075_v35  ;;  %v4344_v8 = vsel %vm3810_vm10, %v1204_v33, %v1205_v25 }
  0xad   :  { %v1814_v55 = vor.u32 %v1813_v38, %v1810_v27  ;;  %v2506_v13 = vrot.slane %v4329_v52, 6  ;;  %v662_v17 = vrot.slane %v660_v49, 4  ;;  %v675_v25 = vrot.slane %v673_v61, 4 }
  0xae   :  { %v883_v12 = vpop.f32.mrf.mxu1  ;;  %v658_v7 = vsel %vm3657_vm3, %v653_v34, %v657_v16  ;;  %v358_v16 = vld [vmem:[%s5063_s0 + $0x98] sm:$0x1]  ;;  %v665_v19 = vrot.slane %v663_v50, 5  ;;  %v1836_v32 = vshrl.u32 %v1584_v4, 16  ;;  %v1839_v34 = vshll.u32 %v1584_v4, 16 }
  0xaf   :  { %v4308_v9 = vpop.f32.mrf.mxu3  ;;  %v4316_v20 = vadd.f32 %v883_v12, %v4223_v41  ;;  %v1822_v41 = vrot.slane %v1820_v1, 6  ;;  %v1832_v1 = vrot.slane %v1830_v46, 6  ;;  %v2379_v12 = vld [vmem:[%s5063_s0 + $0x5c] sm:$0x3]  ;;  %v4372_v33 = vunpack.c.l.b16 %v658_v7  ;;  %v1585_v50 = vld [vmem:[%s5063_s0 + $0x64] sm:$0xf] }
  0xb0   :  { %5081 = vst [vmem:[#allocation10_spill] sm:$0xff] %v4308_v9  ;;  %v1815_v38 = vrot.slane %v1814_v55, 4  ;;  %v2508_v52 = vrot.slane %v2506_v13, 4  ;;  %v679_v49 = vshll.u32 %v358_v16, 16  ;;  %v1281_v56 = vunpack.c.l.b16 %v4333_v5 }
  0xb1   :  { %v4318_v22 = vpop.f32.mrf.mxu0  ;;  %v4354_v36 = vor.u32 %v1822_v41, %v1819_v39  ;;  %v3430_v39 = vrot.slane %v2377_v3, 10  ;;  %v2509_v41 = vrot.slane %v2379_v12, 6  ;;  %v1833_v46 = vor.u32 %v1832_v1, %v1829_v43 }
  0xb2   :  { %v666_v60 = vor.u32 %v665_v19, %v662_v17  ;;  %v676_v47 = vor.u32 %v675_v25, %v4363_v23  ;;  %v1282_v61 = vunpack.c.l.b16 %v4344_v8  ;;  %v1838_v7 = vrot.slane %v1836_v32, 5  ;;  %v1586_v8 = vld [vmem:[%s5063_s0 + $0x68] sm:$0x3] }
  0xb3   :  { %v1824_v5 = vsel %vm3819_vm11, %v1815_v38, %v4354_v36  ;;  %v1845_v3 = vshrl.u32 %v1585_v50, 16  ;;  %v1848_v4 = vshll.u32 %v1585_v50, 16  ;;  %v2507_v12 = vsel %vm3827_vm12, %v3430_v39, %v2506_v13 }
  0xb4   :  { %v4335_v26 = vpop.f32.mrf.mxu2  ;;  %v681_v16 = vrot.slane %v679_v49, 5  ;;  %v667_v19 = vrot.slane %v666_v60, 4  ;;  %v677_v25 = vrot.slane %v676_v47, 4  ;;  %v1855_v39 = vshrl.u32 %v1586_v8, 16  ;;  %v2380_v49 = vld [vmem:[%s5063_s0 + $0x60] sm:$0xc] }
  0xb5   :  { %v1306_v60 = vpack.c.b16 %v1282_v61, %v1281_v56  ;;  %v2077_v47 = vunpack.c.l.b16 %v1824_v5  ;;  %v359_v56 = vld [vmem:[%s5063_s0 + $0x9c] sm:$0xf]  ;;  %v360_v61 = vld [vmem:[%s5063_s0 + $0xa0] sm:$0xf] }
  0xb6   :  { %v886_v14 = vpop.f32.mrf.mxu1 }
  0xb7   :  { %v4352_v35 = vpop.f32.mrf.mxu3  ;;  %v4366_v27 = vadd.f32 %v886_v14, %v4265_v31  ;;  %v1825_v31 = vrot.slane %v4354_v36, 4  ;;  %v2510_v14 = vsel %vm3827_vm12, %v2508_v52, %v2509_v41  ;;  %v2381_v36 = vld [vmem:[%s5063_s0 + $0x64] sm:$0xf]  ;;  %v1850_v41 = vrot.slane %v1848_v4, 6 }
  0xb8   :  { %5082 = vst [vmem:[#allocation11_spill] sm:$0xff] %v4352_v35  ;;  %v1858_v52 = vshll.u32 %v1586_v8, 16  ;;  %v2513_v50 = vrot.slane %v2381_v36, 6  ;;  %v1857_v4 = vrot.slane %v1855_v39, 5 }
  0xb9   :  { %v4368_v28 = vpop.f32.mrf.mxu0  ;;  %3353 = vmatmul.msk.bf16.gmra.mxu1 %vm150_vm0, %v801_v11  ;;  %3389 = vmatmul.msk.bf16.gmra.mxu2 %vm150_vm0, %v1305_v63  ;;  %v1076_v11 = vld [vmem:[%s5063_s0 + $0x60] sm:$0xe]  ;;  %v1078_v63 = vld [vmem:[%s5063_s0 + $0x68] sm:$0x1]  ;;  %v1834_v1 = vsel %vm3819_vm11, %v1825_v31, %v1833_v46  ;;  %v1211_v31 = vrot.slane %v1209_v6, 4  ;;  %v1847_v46 = vrot.slane %v1845_v3, 5 }
  0xba   :  { %v3367_v32 = vrot.slane %v1076_v11, 9  ;;  %v2585_v11 = vunpack.c.l.b16 %v2507_v12 }
  0xbb   :  { %v1851_v12 = vor.u32 %v1850_v41, %v1847_v46 }
  0xbc   :  { %3413 = vmatmul.msk.bf16.gmra.mxu3 %vm150_vm0, %v2101_v54  ;;  %3453 = vmatmul.msk.bf16.gmra.mxu0 %vm150_vm0, %v2609_v2  ;;  %v1841_v54 = vrot.slane %v1839_v34, 6  ;;  %v4397_v55 = vpop.f32.mrf.mxu2  ;;  %v1212_v34 = vrot.slane %v1078_v63, 5  ;;  %v2586_v63 = vunpack.c.l.b16 %v2510_v14  ;;  %v1210_v8 = vsel %vm3810_vm10, %v3367_v32, %v1209_v6 }
  0xbd   :  { %v1860_v14 = vrot.slane %v1858_v52, 6  ;;  %v693_v32 = vshll.u32 %v360_v61, 16  ;;  %v697_v2 = vshrl.u32 %v360_v61, 16  ;;  %v1587_v52 = vld [vmem:[%s5063_s0 + $0x6c] sm:$0xe] }
  0xbe   :  { %v888_v17 = vpop.f32.mrf.mxu1  ;;  %v1842_v13 = vor.u32 %v1841_v54, %v1838_v7  ;;  %v672_v7 = vsel %vm3657_vm3, %v667_v19, %v4363_v23  ;;  %v682_v54 = vsel %vm3657_vm3, %v677_v25, %v681_v16  ;;  %v1213_v5 = vsel %vm3810_vm10, %v1211_v31, %v1212_v34 }
  0xbf   :  { %v4407_v43 = vpop.f32.mrf.mxu3  ;;  %v4419_v38 = vadd.f32 %v888_v17, %v4318_v22  ;;  %v2382_v22 = vld [vmem:[%s5063_s0 + $0x68] sm:$0x3]  ;;  %v2078_v17 = vunpack.c.l.b16 %v1834_v1  ;;  %v3431_v23 = vrot.slane %v2380_v49, 10  ;;  %v2515_v16 = vrot.slane %v2513_v50, 4  ;;  %v1588_v49 = vld [vmem:[%s5063_s0 + $0x70] sm:$0xf] }
  0xc0   :  { %5083 = vst [vmem:[#allocation12_spill] sm:$0xff] %v4407_v43  ;;  %v1843_v3 = vrot.slane %v1842_v13, 4  ;;  %v2516_v6 = vrot.slane %v2382_v22, 6  ;;  %v684_v19 = vshrl.u32 %v359_v56, 16  ;;  %v687_v25 = vshll.u32 %v359_v56, 16 }
  0xc1   :  { %v4421_v44 = vpop.f32.mrf.mxu0  ;;  %v2102_v9 = vpack.c.b16 %v2078_v17, %v2077_v47  ;;  %v2610_v24 = vpack.c.b16 %v2586_v63, %v2585_v11  ;;  %v4448_v35 = vunpack.c.l.b16 %v672_v7  ;;  %v1283_v34 = vunpack.c.l.b16 %v1210_v8  ;;  %v361_v22 = vld [vmem:[%s5063_s0 + $0xa4] sm:$0x1] }
  0xc2   :  { %v4455_v39 = vunpack.c.l.b16 %v682_v54  ;;  %v1284_v46 = vunpack.c.l.b16 %v1213_v5  ;;  %v1852_v41 = vsel %vm3819_vm11, %v1843_v3, %v1851_v12  ;;  %v1853_v47 = vrot.slane %v1851_v12, 4 }
  0xc3   :  { %v1861_v11 = vor.u32 %v1860_v14, %v1857_v4  ;;  %v5085_v63 = vpack.c.b16 %v4372_v33, %v4370_v10  ;;  %v686_v17 = vrot.slane %v684_v19, 4  ;;  %v689_v7 = vrot.slane %v687_v25, 5  ;;  %v1080_v10 = vld [vmem:[%s5063_s0 + $0x70] sm:$0xf]  ;;  %v1079_v19 = vld [vmem:[%s5063_s0 + $0x6c] sm:$0xe] }
  0xc4   :  { %v4444_v1 = vpop.f32.mrf.mxu2  ;;  %v4477_v54 = vrot.slane %v693_v32, 5  ;;  %v699_v8 = vrot.slane %v697_v2, 4  ;;  %v1864_v33 = vshrl.u32 %v1587_v52, 16  ;;  %v1876_v56 = vshll.u32 %v1588_v49, 16  ;;  %v362_v32 = vld [vmem:[%s5063_s0 + $0xa8] sm:$0xf] }
  0xc5   :  { %v4486_v5 = vpack.c.b16 %v1284_v46, %v1283_v34  ;;  %v2079_v2 = vunpack.c.l.b16 %v1852_v41  ;;  %v703_v4 = vshll.u32 %v361_v22, 16  ;;  %v1216_v25 = vrot.slane %v1080_v10, 5  ;;  %v1081_v46 = vld [vmem:[%s5063_s0 + $0x74] sm:$0x1]  ;;  %v363_v10 = vld [vmem:[%s5063_s0 + $0xac] sm:$0xf] }
  0xc6   :  { %v891_v43 = vpop.f32.mrf.mxu1  ;;  %v1866_v41 = vrot.slane %v1864_v33, 5  ;;  %v708_v33 = vshrl.u32 %v362_v32, 16  ;;  %v717_v45 = vshll.u32 %v363_v10, 16 }
  0xc7   :  { %v4446_v36 = vpop.f32.mrf.mxu3  ;;  %v4451_v31 = vadd.f32 %v891_v43, %v4368_v28  ;;  %v2514_v28 = vsel %vm3827_vm12, %v3431_v23, %v2513_v50  ;;  %v2517_v43 = vsel %vm3827_vm12, %v2515_v16, %v2516_v6  ;;  %v1867_v50 = vshll.u32 %v1587_v52, 16  ;;  %v1589_v23 = vld [vmem:[%s5063_s0 + $0x74] sm:$0x3] }
  0xc8   :  { %5084 = vst [vmem:[#allocation13_spill] sm:$0xff] %v4446_v36  ;;  %v2588_v14 = vunpack.c.l.b16 %v2517_v43  ;;  %v690_v16 = vor.u32 %v689_v7, %v686_v17  ;;  %v700_v6 = vor.u32 %v699_v8, %v4477_v54  ;;  %v1886_v22 = vshll.u32 %v1589_v23, 16  ;;  %v2384_v17 = vld [vmem:[%s5063_s0 + $0x70] sm:$0xf] }
  0xc9   :  { %v4453_v13 = vpop.f32.mrf.mxu0  ;;  %3354 = vmatmul.msk.bf16.gmra.mxu1 %vm150_vm0, %v5085_v63  ;;  %3390 = vmatmul.msk.bf16.gmra.mxu2 %vm150_vm0, %v1306_v60  ;;  %v1873_v60 = vshrl.u32 %v1588_v49, 16  ;;  %v1869_v52 = vrot.slane %v1867_v50, 6  ;;  %v1883_v63 = vshrl.u32 %v1589_v23, 16  ;;  %v705_v7 = vrot.slane %v703_v4, 5  ;;  %v2383_v23 = vld [vmem:[%s5063_s0 + $0x6c] sm:$0xc] }
  0xca   :  { %v3368_v8 = vrot.slane %v1079_v19, 9  ;;  %v711_v50 = vshll.u32 %v362_v32, 16  ;;  %v2520_v36 = vrot.slane %v2384_v17, 6  ;;  %v1888_v19 = vrot.slane %v1886_v22, 6 }
  0xcb   :  { %v1875_v49 = vrot.slane %v1873_v60, 5  ;;  %v691_v60 = vrot.slane %v690_v16, 4  ;;  %v1885_v4 = vrot.slane %v1883_v63, 5  ;;  %v721_v32 = vshrl.u32 %v363_v10, 16 }
  0xcc   :  { %3414 = vmatmul.msk.bf16.gmra.mxu3 %vm150_vm0, %v2102_v9  ;;  %3454 = vmatmul.msk.bf16.gmra.mxu0 %vm150_vm0, %v2610_v24  ;;  %v4488_v3 = vpop.f32.mrf.mxu2  ;;  %v1862_v9 = vsel %vm3819_vm11, %v1853_v47, %v1861_v11  ;;  %v2587_v24 = vunpack.c.l.b16 %v2514_v28  ;;  %v1878_v47 = vrot.slane %v1876_v56, 6  ;;  %v1218_v56 = vrot.slane %v1216_v25, 4 }
  0xcd   :  { %v2080_v43 = vunpack.c.l.b16 %v1862_v9  ;;  %v1870_v9 = vor.u32 %v1869_v52, %v1866_v41  ;;  %v696_v52 = vsel %vm3657_vm3, %v691_v60, %v4477_v54  ;;  %v2522_v17 = vrot.slane %v2520_v36, 4 }
  0xce   :  { %v893_v34 = vpop.f32.mrf.mxu1  ;;  %v2611_v61 = vpack.c.b16 %v2588_v14, %v2587_v24  ;;  %v4528_v24 = vsel %vm3810_vm10, %v3368_v8, %v1216_v25  ;;  %v710_v14 = vrot.slane %v708_v33, 4  ;;  %v1590_v25 = vld [vmem:[%s5063_s0 + $0x78] sm:$0xe]  ;;  %v2523_v8 = vrot.slane %v2385_v15, 6 }
  0xcf   :  { %v4495_v12 = vpop.f32.mrf.mxu3  ;;  %v4508_v11 = vadd.f32 %v893_v34, %v4421_v44  ;;  %v701_v44 = vrot.slane %v700_v6, 4  ;;  %v1219_v34 = vrot.slane %v1081_v46, 5  ;;  %v2103_v6 = vpack.c.b16 %v2080_v43, %v2079_v2 }
  0xd0   :  { %5086 = vst [vmem:[#allocation14_spill] sm:$0xff] %v4495_v12  ;;  %v1879_v12 = vor.u32 %v1878_v47, %v1875_v49  ;;  %v713_v46 = vrot.slane %v711_v50, 5  ;;  %v3432_v2 = vrot.slane %v2383_v23, 10  ;;  %v1871_v63 = vrot.slane %v1870_v9, 4 }
  0xd1   :  { %v4510_v28 = vpop.f32.mrf.mxu0  ;;  %v706_v49 = vsel %vm3657_vm3, %v701_v44, %v705_v7  ;;  %v4539_v47 = vsel %vm3810_vm10, %v1218_v56, %v1219_v34  ;;  %v1889_v33 = vor.u32 %v1888_v19, %v1885_v4  ;;  %v364_v7 = vld [vmem:[%s5063_s0 + $0xb0] sm:$0x1]  ;;  %v4550_v50 = vrot.slane %v717_v45, 5  ;;  %v1083_v56 = vld [vmem:[%s5063_s0 + $0x7c] sm:$0xf] }
  0xd2   :  { %v1881_v22 = vrot.slane %v1879_v12, 4  ;;  %v723_v60 = vrot.slane %v721_v32, 4  ;;  %v714_v44 = vor.u32 %v713_v46, %v710_v14  ;;  %v1892_v34 = vshrl.u32 %v1590_v25, 16  ;;  %v1082_v4 = vld [vmem:[%s5063_s0 + $0x78] sm:$0xe] }
  0xd3   :  { %v1895_v9 = vshll.u32 %v1590_v25, 16  ;;  %v5089_v15 = vpack.c.b16 %v4455_v39, %v4448_v35  ;;  %v4563_v45 = vunpack.c.l.b16 %v706_v49  ;;  %v1285_v23 = vunpack.c.l.b16 %v4528_v24  ;;  %v1591_v32 = vld [vmem:[%s5063_s0 + $0x7c] sm:$0xf] }
  0xd4   :  { %v4524_v16 = vpop.f32.mrf.mxu2  ;;  %v1286_v35 = vunpack.c.l.b16 %v4539_v47  ;;  %v1880_v39 = vsel %vm3819_vm11, %v1871_v63, %v1879_v12  ;;  %v727_v19 = vshll.u32 %v364_v7, 16  ;;  %v1890_v24 = vsel %vm3819_vm11, %v1881_v22, %v1889_v33  ;;  %v1592_v63 = vld [vmem:[%s5063_s0 + $0x80] sm:$0x3] }
  0xd5   :  { %5087 = vst [vmem:[#allocation15_spill] sm:$0xff] %v4524_v16  ;;  %v1223_v14 = vrot.slane %v1083_v56, 5  ;;  %v3369_v12 = vrot.slane %v1082_v4, 9  ;;  %v1894_v49 = vrot.slane %v1892_v34, 5  ;;  %v1897_v47 = vrot.slane %v1895_v9, 6 }
  0xd6   :  { %v896_v43 = vpop.f32.mrf.mxu1  ;;  %v1901_v22 = vshrl.u32 %v1591_v32, 16 }
  0xd7   :  { %v4530_v41 = vpop.f32.mrf.mxu3  ;;  %v4545_v10 = vadd.f32 %v896_v43, %v4453_v13  ;;  %v4561_v13 = vunpack.c.l.b16 %v696_v52  ;;  %v715_v52 = vrot.slane %v714_v44, 4  ;;  %v2081_v43 = vunpack.c.l.b16 %v1880_v39 }
  0xd8   :  { %5088 = vst [vmem:[#allocation16_spill] sm:$0xff] %v4530_v41  ;;  %v1225_v4 = vrot.slane %v1223_v14, 4  ;;  %v1224_v9 = vsel %vm3810_vm10, %v3369_v12, %v1223_v14  ;;  %v1898_v39 = vor.u32 %v1897_v47, %v1894_v49  ;;  %v365_v47 = vld [vmem:[%s5063_s0 + $0xb4] sm:$0xf] }
  0xd9   :  { %v2688_v54 = vpop.f32.mrf.mxu0  ;;  %3355 = vmatmul.msk.bf16.gmra.mxu1 %vm150_vm0, %v5089_v15  ;;  %3391 = vmatmul.msk.bf16.gmra.mxu2 %vm150_vm0, %v4486_v5  ;;  %v2521_v5 = vsel %vm3827_vm12, %v3432_v2, %v2520_v36  ;;  %v1084_v36 = vld [vmem:[%s5063_s0 + $0x80] sm:$0x1] }
  0xda   :  { %v2589_v33 = vunpack.c.l.b16 %v2521_v5  ;;  %v1226_v34 = vrot.slane %v1084_v36, 5  ;;  %v2387_v5 = vld [vmem:[%s5063_s0 + $0x7c] sm:$0xf] }
  0xdc   :  { %3415 = vmatmul.msk.bf16.gmra.mxu3 %vm150_vm0, %v2103_v6  ;;  %3455 = vmatmul.msk.bf16.gmra.mxu0 %vm150_vm0, %v2611_v61  ;;  %v2524_v6 = vsel %vm3827_vm12, %v2522_v17, %v2523_v8  ;;  %v724_v61 = vor.u32 %v723_v60, %v4550_v50  ;;  %v1384_v46 = vpop.f32.mrf.mxu2  ;;  %v1904_v17 = vshll.u32 %v1591_v32, 16  ;;  %v2082_v8 = vunpack.c.l.b16 %v1890_v24 }
  0xdd   :  { %v1496_v2 = vadd.f32 %v1384_v46, %v4164_v57  ;;  %v2590_v7 = vunpack.c.l.b16 %v2524_v6  ;;  %v729_v60 = vrot.slane %v727_v19, 5  ;;  %v720_v57 = vsel %vm3657_vm3, %v715_v52, %v4550_v50 }
  0xde   :  { %v725_v15 = vrot.slane %v724_v61, 4  ;;  %v1911_v46 = vshrl.u32 %v1592_v63, 16  ;;  %v1903_v19 = vrot.slane %v1901_v22, 5  ;;  %v1906_v24 = vrot.slane %v1904_v17, 6  ;;  %v2386_v61 = vld [vmem:[%s5063_s0 + $0x78] sm:$0xc] }
  0xdf   :  { %v2180_v25 = vpop.f32.mrf.mxu3  ;;  %v1914_v6 = vshll.u32 %v1592_v63, 16  ;;  %v804_v50 = vpack.c.b16 %v4563_v45, %v4561_v13  ;;  %v1308_v52 = vpack.c.b16 %v1286_v35, %v1285_v23  ;;  %v2612_v36 = vpack.c.b16 %v2590_v7, %v2589_v33  ;;  %v2388_v13 = vld [vmem:[%s5063_s0 + $0x80] sm:$0x3]  ;;  %v366_v33 = vld [vmem:[%s5063_s0 + $0xb8] sm:$0xf] }
  0xe0   :  { %v2292_v44 = vadd.f32 %v2180_v25, %v1496_v2  ;;  %v2104_v14 = vpack.c.b16 %v2082_v8, %v2081_v43  ;;  %v730_v12 = vsel %vm3657_vm3, %v725_v15, %v729_v60  ;;  %v1227_v49 = vsel %vm3810_vm10, %v1225_v4, %v1226_v34  ;;  %v4623_v7 = vld [vmem:[%s5065_s2] sm:$0xff] }
  0xe1   :  { %v2690_v56 = vpop.f32.mrf.mxu0  ;;  %v4611_v25 = vunpack.c.l.b16 %v720_v57  ;;  %v1287_v63 = vunpack.c.l.b16 %v1224_v9  ;;  %v1899_v22 = vrot.slane %v1898_v39, 4  ;;  %v3433_v45 = vrot.slane %v2386_v61, 10  ;;  %v4630_v39 = vld [vmem:[%s5065_s2 + $0x8] sm:$0xff] }
  0xe2   :  { %v2800_v32 = vadd.f32 %v2688_v54, %v2292_v44  ;;  %v2527_v54 = vrot.slane %v2387_v5, 6  ;;  %v1907_v43 = vor.u32 %v1906_v24, %v1903_v19  ;;  %v1913_v17 = vrot.slane %v1911_v46, 5 }
  0xe3   :  { %v1916_v8 = vrot.slane %v1914_v6, 6  ;;  %v4625_v60 = vunpack.c.l.b16 %v730_v12  ;;  %v1288_v44 = vunpack.c.l.b16 %v1227_v49  ;;  %v732_v15 = vshrl.u32 %v365_v47, 16 }
  0xe4   :  { %v1386_v2 = vpop.f32.mrf.mxu2  ;;  %v735_v4 = vshll.u32 %v365_v47, 16  ;;  %v2529_v57 = vrot.slane %v2527_v54, 4  ;;  %v2530_v9 = vrot.slane %v2388_v13, 6  ;;  %v1908_v46 = vsel %vm3819_vm11, %v1899_v22, %v1907_v43  ;;  %v1593_v47 = vld [vmem:[%s5063_s0 + $0x84] sm:$0xe] }
  0xe5   :  { %v1497_v23 = vadd.f32 %v1386_v2, %v4221_v40  ;;  %v4636_v5 = vsel %vm3827_vm12, %v3433_v45, %v2527_v54  ;;  %v741_v19 = vshll.u32 %v366_v33, 16  ;;  %v745_v24 = vshrl.u32 %v366_v33, 16 }
  0xe6   :  { %v2898_v6 = vadd.f32 %v4623_v7, %v2800_v32  ;;  %v1909_v12 = vrot.slane %v1907_v43, 4  ;;  %v1917_v49 = vor.u32 %v1916_v8, %v1913_v17  ;;  %v4648_v2 = vpack.c.b16 %v1288_v44, %v1287_v63 }
  0xe7   :  { %v2182_v35 = vpop.f32.mrf.mxu3  ;;  %v737_v32 = vrot.slane %v735_v4, 5  ;;  %v2531_v22 = vsel %vm3827_vm12, %v2529_v57, %v2530_v9  ;;  %v2591_v13 = vunpack.c.l.b16 %v4636_v5  ;;  %v4660_v45 = vrot.slane %v741_v19, 5 }
  0xe8   :  { %v2293_v34 = vadd.f32 %v2182_v35, %v1497_v23  ;;  %v747_v23 = vrot.slane %v745_v24, 4  ;;  %v1086_v35 = vld [vmem:[%s5063_s0 + $0x88] sm:$0xf]  ;;  %v1920_v43 = vshrl.u32 %v1593_v47, 16  ;;  %v1923_v17 = vshll.u32 %v1593_v47, 16 }
  0xe9   :  { %v2693_v40 = vpop.f32.mrf.mxu0  ;;  %3356 = vmatmul.msk.bf16.gmra.mxu1 %vm150_vm0, %v804_v50  ;;  %3392 = vmatmul.msk.bf16.gmra.mxu2 %vm150_vm0, %v1308_v52  ;;  %v2083_v52 = vunpack.c.l.b16 %v1908_v46  ;;  %v2930_v8 = vmax.f32 %v2898_v6, 0.0  ;;  %v1918_v4 = vsel %vm3819_vm11, %v1909_v12, %v1917_v49  ;;  %v2592_v57 = vunpack.c.l.b16 %v2531_v22  ;;  %v1595_v46 = vld [vmem:[%s5063_s0 + $0x8c] sm:$0x3] }
  0xea   :  { %v2801_v61 = vadd.f32 %v2690_v56, %v2293_v34  ;;  %v734_v56 = vrot.slane %v732_v15, 4  ;;  %v1085_v34 = vld [vmem:[%s5063_s0 + $0x84] sm:$0xe]  ;;  %v1230_v47 = vrot.slane %v1086_v35, 5  ;;  %v1087_v12 = vld [vmem:[%s5063_s0 + $0x8c] sm:$0x1] }
  0xeb   :  { %v3370_v49 = vrot.slane %v1085_v34, 9  ;;  %v1922_v22 = vrot.slane %v1920_v43, 5  ;;  %v1233_v34 = vrot.slane %v1087_v12, 5 }
  0xec   :  { %3416 = vmatmul.msk.bf16.gmra.mxu3 %vm150_vm0, %v2104_v14  ;;  %3456 = vmatmul.msk.bf16.gmra.mxu0 %vm150_vm0, %v2612_v36  ;;  %v2899_v50 = vadd.f32 %v4630_v39, %v2801_v61  ;;  %v367_v14 = vld [vmem:[%s5063_s0 + $0xbc] sm:$0x1]  ;;  %v1594_v36 = vld [vmem:[%s5063_s0 + $0x88] sm:$0xf]  ;;  %v1389_v63 = vpop.f32.mrf.mxu2  ;;  %v738_v9 = vor.u32 %v737_v32, %v734_v56  ;;  %v1925_v56 = vrot.slane %v1923_v17, 6  ;;  %v1232_v17 = vrot.slane %v1230_v47, 4 }
  0xed   :  { %v1498_v44 = vadd.f32 %v1389_v63, %v4263_v30  ;;  %v1929_v5 = vshrl.u32 %v1594_v36, 16  ;;  %v1932_v19 = vshll.u32 %v1594_v36, 16  ;;  %v751_v30 = vshll.u32 %v367_v14, 16  ;;  %v3528_v36 = vld [vmem:[%s5066_s3 + $0x38] sm:$0xff]  ;;  %v2390_v14 = vld [vmem:[%s5063_s0 + $0x88] sm:$0xf] }
  0xee   :  { %v2931_v33 = vmax.f32 %v2899_v50, 0.0  ;;  %v748_v50 = vor.u32 %v747_v23, %v4660_v45  ;;  %v2084_v23 = vunpack.c.l.b16 %v1918_v4  ;;  %v739_v35 = vrot.slane %v738_v9, 4  ;;  %3213 = vmatpush.bf16.msra.mxu1 %v3528_v36 }
  0xef   :  { %v2185_v15 = vpop.f32.mrf.mxu3  ;;  %v753_v43 = vrot.slane %v751_v30, 5  ;;  %v4691_v58 = vsel %vm3810_vm10, %v3370_v49, %v1230_v47  ;;  %v1926_v4 = vor.u32 %v1925_v56, %v1922_v22  ;;  %v2534_v9 = vrot.slane %v2390_v14, 6 }
  0xf0   :  { %v2962_v24 = vmax.f32 %v2930_v8, %v2931_v33  ;;  %v2294_v6 = vadd.f32 %v2185_v15, %v1498_v44  ;;  %v1939_v8 = vshrl.u32 %v1595_v46, 16  ;;  %v1942_v33 = vshll.u32 %v1595_v46, 16 }
  0xf1   :  { %v2695_v61 = vpop.f32.mrf.mxu0  ;;  %v1931_v44 = vrot.slane %v1929_v5, 5  ;;  %v1934_v15 = vrot.slane %v1932_v19, 6  ;;  %v749_v41 = vrot.slane %v748_v50, 4  ;;  %v2105_v36 = vpack.c.b16 %v2084_v23, %v2083_v52 }
  0xf2   :  { %v2963_v32 = vrot.slane %v2962_v24, 4  ;;  %v2802_v63 = vadd.f32 %v2693_v40, %v2294_v6  ;;  %v2389_v40 = vld [vmem:[%s5063_s0 + $0x84] sm:$0xc]  ;;  %v4687_v6 = vpop.f32.mrf.mxu1  ;;  %v1941_v30 = vrot.slane %v1939_v8, 5  ;;  %v1944_v12 = vrot.slane %v1942_v33, 6 }
  0xf3   :  { %v744_v50 = vsel %vm3657_vm3, %v739_v35, %v4660_v45  ;;  %v1935_v16 = vor.u32 %v1934_v15, %v1931_v44  ;;  %v3434_v47 = vrot.slane %v2389_v40, 10  ;;  %v754_v52 = vsel %vm3657_vm3, %v749_v41, %v753_v43 }
  0xf4   :  { %v2964_v54 = vmax.f32 %v2962_v24, %v2963_v32  ;;  %v1391_v46 = vpop.f32.mrf.mxu2  ;;  %v2613_v24 = vpack.c.b16 %v2592_v57, %v2591_v13  ;;  %v2391_v32 = vld [vmem:[%s5063_s0 + $0x8c] sm:$0x3]  ;;  %v1289_v13 = vunpack.c.l.b16 %v4691_v58  ;;  %v1596_v57 = vld [vmem:[%s5063_s0 + $0x90] sm:$0xe]  ;;  %v1927_v8 = vrot.slane %v1926_v4, 4 }
  0xf5   :  { %v1499_v5 = vadd.f32 %v1391_v46, %v4316_v20  ;;  %v4702_v20 = vsel %vm3810_vm10, %v1232_v17, %v1233_v34  ;;  %v2536_v45 = vrot.slane %v2534_v9, 4  ;;  %v2537_v33 = vrot.slane %v2391_v32, 6  ;;  %v1089_v17 = vld [vmem:[%s5063_s0 + $0x94] sm:$0xf] }
  0xf6   :  { %v2965_v49 = vrot.slane %v2964_v54, 2  ;;  %v2900_v14 = vadd.f32 %v4623_v7, %v2802_v63  ;;  %v5090_v35 = vpack.c.b16 %v4625_v60, %v4611_v25  ;;  %v4717_v58 = vunpack.c.l.b16 %v744_v50 }
  0xf7   :  { %v2187_v19 = vpop.f32.mrf.mxu3  ;;  %v1945_v44 = vor.u32 %v1944_v12, %v1941_v30  ;;  %v1937_v41 = vrot.slane %v1935_v16, 4  ;;  %v2535_v25 = vsel %vm3827_vm12, %v3434_v47, %v2534_v9  ;;  %v1948_v60 = vshrl.u32 %v1596_v57, 16  ;;  %v1598_v12 = vld [vmem:[%s5063_s0 + $0x98] sm:$0x3] }
  0xf8   :  { %v2295_v22 = vadd.f32 %v2187_v19, %v1499_v5  ;;  %v2966_v63 = vmax.f32 %v2964_v54, %v2965_v49  ;;  %v4727_v15 = vunpack.c.l.b16 %v754_v52  ;;  %v1290_v43 = vunpack.c.l.b16 %v4702_v20 }
  0xf9   :  { %v2698_v56 = vpop.f32.mrf.mxu0  ;;  %3357 = vmatmul.msk.bf16.gmra.mxu1 %vm150_vm0, %v5090_v35  ;;  %3393 = vmatmul.msk.bf16.gmra.mxu2 %vm150_vm0, %v4648_v2  ;;  %v1936_v40 = vsel %vm3819_vm11, %v1927_v8, %v1935_v16  ;;  %v2538_v46 = vsel %vm3827_vm12, %v2536_v45, %v2537_v33  ;;  %v1957_v4 = vshrl.u32 %v1597_v29, 16  ;;  %v1960_v9 = vshll.u32 %v1597_v29, 16  ;;  %v1090_v8 = vld [vmem:[%s5063_s0 + $0x98] sm:$0x1] }
  0xfa   :  { %v2803_v23 = vadd.f32 %v2695_v61, %v2295_v22  ;;  %v1951_v61 = vshll.u32 %v1596_v57, 16  ;;  %v2932_v54 = vmax.f32 %v2900_v14, 0.0  ;;  %v2593_v30 = vunpack.c.l.b16 %v2535_v25  ;;  %v4741_v32 = vpop.f32.mrf.mxu1  ;;  %v2393_v25 = vld [vmem:[%s5063_s0 + $0x94] sm:$0xf] }
  0xfb   :  { %v1946_v16 = vsel %vm3819_vm11, %v1937_v41, %v1945_v44  ;;  %v1950_v50 = vrot.slane %v1948_v60, 5  ;;  %v2967_v49 = vrot.slane %v2966_v63, 1  ;;  %v2085_v52 = vunpack.c.l.b16 %v1936_v40 }
  0xfc   :  { %3417 = vmatmul.msk.bf16.gmra.mxu3 %vm150_vm0, %v2105_v36  ;;  %3457 = vmatmul.msk.bf16.gmra.mxu0 %vm150_vm0, %v2613_v24  ;;  %v2901_v2 = vadd.f32 %v4630_v39, %v2803_v23  ;;  %v1394_v34 = vpop.f32.mrf.mxu2  ;;  %v1237_v36 = vrot.slane %v1089_v17, 5  ;;  %v1953_v47 = vrot.slane %v1951_v61, 6  ;;  %v1959_v45 = vrot.slane %v1957_v4, 5  ;;  %v2392_v4 = vld [vmem:[%s5063_s0 + $0x90] sm:$0xc] }
  0xfd   :  { %v1500_v19 = vadd.f32 %v1394_v34, %v4366_v27  ;;  %v1088_v27 = vld [vmem:[%s5063_s0 + $0x90] sm:$0xe]  ;;  %v1962_v33 = vrot.slane %v1960_v9, 6  ;;  %v1967_v14 = vshrl.u32 %v1598_v12, 16  ;;  %v1970_v23 = vshll.u32 %v1598_v12, 16 }
  0xfe   :  { %v2933_v5 = vmax.f32 %v2901_v2, 0.0  ;;  %v2086_v29 = vunpack.c.l.b16 %v1946_v16  ;;  %v2594_v41 = vunpack.c.l.b16 %v2538_v46  ;;  %v3371_v60 = vrot.slane %v1088_v27, 9  ;;  %v2394_v46 = vld [vmem:[%s5063_s0 + $0x98] sm:$0x3] }
  0xff   :  { %v2190_v24 = vpop.f32.mrf.mxu3  ;;  %v1239_v61 = vrot.slane %v1237_v36, 4  ;;  %v1240_v2 = vrot.slane %v1090_v8, 5  ;;  %v1954_v17 = vor.u32 %v1953_v47, %v1950_v50  ;;  %v2968_v34 = vmax.f32 %v2966_v63, %v2967_v49 }
 0x100   :  { %v2969_v22 = vmax.f32 %v2932_v54, %v2933_v5  ;;  %v2296_v20 = vadd.f32 %v2190_v24, %v1500_v19  ;;  %v1310_v54 = vpack.c.b16 %v1290_v43, %v1289_v13  ;;  %v1963_v5 = vor.u32 %v1962_v33, %v1959_v45 }
 0x101   :  { %v2700_v57 = vpop.f32.mrf.mxu0  ;;  %v1972_v19 = vrot.slane %v1970_v23, 6  ;;  %v2541_v24 = vrot.slane %v2393_v25, 6  ;;  %v806_v13 = vpack.c.b16 %v4727_v15, %v4717_v58  ;;  %v2614_v63 = vpack.c.b16 %v2594_v41, %v2593_v30  ;;  %v1599_v58 = vld [vmem:[%s5063_s0 + $0x9c] sm:$0xe] }
 0x102   :  { %v2970_v35 = vrot.slane %v2969_v22, 4  ;;  %v2804_v44 = vadd.f32 %v2698_v56, %v2296_v20  ;;  %v1969_v56 = vrot.slane %v1967_v14, 5  ;;  %v2106_v43 = vpack.c.b16 %v2086_v29, %v2085_v52  ;;  %v4774_v30 = vpop.f32.mrf.mxu1 }
 0x103   :  { %v4765_v47 = vsel %vm3810_vm10, %v3371_v60, %v1237_v36  ;;  %v4769_v49 = vsel %vm3810_vm10, %v1239_v61, %v1240_v2  ;;  %v3435_v45 = vrot.slane %v2392_v4, 10  ;;  %v3074_v15 = vpack.c.bf16 %v2968_v34, %v2968_v34 }
 0x104   :  { %v2971_v40 = vmax.f32 %v2969_v22, %v2970_v35  ;;  %v1396_v9 = vpop.f32.mrf.mxu2  ;;  %v1955_v22 = vrot.slane %v1954_v17, 4  ;;  %v1965_v52 = vrot.slane %v1963_v5, 4  ;;  %v1973_v36 = vor.u32 %v1972_v19, %v1969_v56 }
 0x105   :  { %v1501_v16 = vadd.f32 %v1396_v9, %v4419_v38  ;;  %v2544_v38 = vrot.slane %v2394_v46, 6  ;;  %v2543_v33 = vrot.slane %v2541_v24, 4  ;;  %v2902_v23 = vadd.f32 %v4623_v7, %v2804_v44  ;;  %v1600_v44 = vld [vmem:[%s5063_s0 + $0xa0] sm:$0xf] }
 0x106   :  { %v2972_v12 = vrot.slane %v2971_v40, 2  ;;  %v1291_v29 = vunpack.c.l.b16 %v4765_v47  ;;  %v1292_v41 = vunpack.c.l.b16 %v4769_v49  ;;  %v1976_v25 = vshrl.u32 %v1599_v58, 16 }
 0x107   :  { %v2192_v50 = vpop.f32.mrf.mxu3  ;;  %v1979_v2 = vshll.u32 %v1599_v58, 16  ;;  %v3126_v17 = vunpack.c.l.b16 %v3074_v15  ;;  %v2545_v4 = vsel %vm3827_vm12, %v2543_v33, %v2544_v38  ;;  %v2934_v56 = vmax.f32 %v2902_v23, 0.0  ;;  %v3527_v33 = vld [vmem:[%s5066_s3 + $0x30] sm:$0xff] }
 0x108   :  { %v2973_v20 = vmax.f32 %v2971_v40, %v2972_v12  ;;  %v2297_v27 = vadd.f32 %v2192_v50, %v1501_v16  ;;  %v1974_v40 = vsel %vm3819_vm11, %v1965_v52, %v1973_v36  ;;  %v1092_v12 = vld [vmem:[%s5063_s0 + $0xa0] sm:$0xf]  ;;  %v1091_v50 = vld [vmem:[%s5063_s0 + $0x9c] sm:$0xe]  ;;  %v2596_v38 = vunpack.c.l.b16 %v2545_v4  ;;  %3214 = vmatpush.bf16.msra.mxu1 %v3527_v33 }
 0x109   :  { %v2703_v8 = vpop.f32.mrf.mxu0  ;;  %3358 = vmatmul.msk.bf16.gmra.mxu1 %vm150_vm0, %v806_v13  ;;  %3394 = vmatmul.msk.bf16.gmra.mxu2 %vm150_vm0, %v1310_v54  ;;  %v2542_v54 = vsel %vm3827_vm12, %v3435_v45, %v2541_v24  ;;  %v1978_v13 = vrot.slane %v1976_v25, 5  ;;  %v1985_v24 = vshrl.u32 %v1600_v44, 16  ;;  %v1244_v58 = vrot.slane %v1092_v12, 5  ;;  %v2395_v12 = vld [vmem:[%s5063_s0 + $0x9c] sm:$0xc] }
 0x10a   :  { %v2974_v14 = vrot.slane %v2973_v20, 1  ;;  %v2805_v35 = vadd.f32 %v2700_v57, %v2297_v27  ;;  %v1964_v57 = vsel %vm3819_vm11, %v1955_v22, %v1963_v5  ;;  %v2088_v27 = vunpack.c.l.b16 %v1974_v40 }
 0x10b   :  { %v2087_v16 = vunpack.c.l.b16 %v1964_v57  ;;  %v2595_v45 = vunpack.c.l.b16 %v2542_v54  ;;  %v3372_v23 = vrot.slane %v1091_v50, 9  ;;  %v1987_v25 = vrot.slane %v1985_v24, 5 }
 0x10c   :  { %3418 = vmatmul.msk.bf16.gmra.mxu3 %vm150_vm0, %v2106_v43  ;;  %3458 = vmatmul.msk.bf16.gmra.mxu0 %vm150_vm0, %v2614_v63  ;;  %v2975_v60 = vmax.f32 %v2973_v20, %v2974_v14  ;;  %v2903_v61 = vadd.f32 %v4630_v39, %v2805_v35  ;;  %v1399_v34 = vpop.f32.mrf.mxu2  ;;  %v1988_v63 = vshll.u32 %v1600_v44, 16  ;;  %v1981_v20 = vrot.slane %v1979_v2, 6  ;;  %v1093_v14 = vld [vmem:[%s5063_s0 + $0xa4] sm:$0x1]  ;;  %v4814_v35 = vpop.f32.mrf.mxu1 }
 0x10d   :  { %v1502_v5 = vadd.f32 %v1399_v34, %v4451_v31  ;;  %v1601_v31 = vld [vmem:[%s5063_s0 + $0xa4] sm:$0x3]  ;;  %v1311_v34 = vpack.c.b16 %v1292_v41, %v1291_v29  ;;  %v2107_v40 = vpack.c.b16 %v2088_v27, %v2087_v16  ;;  %v1246_v54 = vrot.slane %v1244_v58, 4 }
 0x10e   :  { %v3075_v9 = vpack.c.bf16 %v2975_v60, %v2975_v60  ;;  %v2935_v19 = vmax.f32 %v2903_v61, 0.0  ;;  %v1990_v60 = vrot.slane %v1988_v63, 6  ;;  %v1995_v61 = vshrl.u32 %v1601_v31, 16  ;;  %v2397_v29 = vld [vmem:[%s5063_s0 + $0xa4] sm:$0x3] }
 0x10f   :  { %v2195_v46 = vpop.f32.mrf.mxu3  ;;  %v1998_v57 = vshll.u32 %v1601_v31, 16  ;;  %v1982_v2 = vor.u32 %v1981_v20, %v1978_v13  ;;  %v1247_v4 = vrot.slane %v1093_v14, 5  ;;  %v3436_v20 = vrot.slane %v2395_v12, 10 }
 0x110   :  { %v3127_v43 = vunpack.c.l.b16 %v3075_v9  ;;  %v2976_v47 = vmax.f32 %v2934_v56, %v2935_v19  ;;  %v2298_v49 = vadd.f32 %v2195_v46, %v1502_v5  ;;  %v2615_v5 = vpack.c.b16 %v2596_v38, %v2595_v45 }
 0x111   :  { %v2705_v22 = vpop.f32.mrf.mxu0  ;;  %v4822_v46 = vsel %vm3810_vm10, %v3372_v23, %v1244_v58  ;;  %v1991_v50 = vor.u32 %v1990_v60, %v1987_v25  ;;  %v1997_v13 = vrot.slane %v1995_v61, 5  ;;  %v2000_v24 = vrot.slane %v1998_v57, 6 }
 0x112   :  { %v4806_v15 = vsel %vm3142_vm13, %v3127_v43, %v3126_v17  ;;  %v2977_v52 = vrot.slane %v2976_v47, 4  ;;  %v2806_v36 = vadd.f32 %v2703_v8, %v2298_v49  ;;  %v2396_v8 = vld [vmem:[%s5063_s0 + $0xa0] sm:$0xf]  ;;  %v1983_v43 = vrot.slane %v1982_v2, 4 }
 0x113   :  { %v2548_v41 = vrot.slane %v2396_v8, 6  ;;  %v1248_v49 = vsel %vm3810_vm10, %v1246_v54, %v1247_v4  ;;  %v1293_v31 = vunpack.c.l.b16 %v4822_v46  ;;  %v2551_v58 = vrot.slane %v2397_v29, 6 }
 0x114   :  { %v2978_v44 = vmax.f32 %v2976_v47, %v2977_v52  ;;  %v1401_v17 = vpop.f32.mrf.mxu2  ;;  %v1602_v47 = vld [vmem:[%s5063_s0 + $0xa8] sm:$0xe]  ;;  %v2904_v45 = vadd.f32 %v4623_v7, %v2806_v36  ;;  %v1603_v52 = vld [vmem:[%s5063_s0 + $0xac] sm:$0xf]  ;;  %v1993_v33 = vrot.slane %v1991_v50, 4  ;;  %v2001_v14 = vor.u32 %v2000_v24, %v1997_v13  ;;  %v4846_v57 = vpop.f32.mrf.mxu1 }
 0x115   :  { %v1503_v56 = vadd.f32 %v1401_v17, %v4508_v11  ;;  %v2550_v23 = vrot.slane %v2548_v41, 4  ;;  %v2004_v25 = vshrl.u32 %v1602_v47, 16  ;;  %v2007_v36 = vshll.u32 %v1602_v47, 16 }
 0x116   :  { %v2979_v9 = vrot.slane %v2978_v44, 2  ;;  %v1294_v2 = vunpack.c.l.b16 %v1248_v49  ;;  %v2549_v8 = vsel %vm3827_vm12, %v3436_v20, %v2548_v41  ;;  %v2013_v17 = vshrl.u32 %v1603_v52, 16 }
 0x117   :  { %v2197_v19 = vpop.f32.mrf.mxu3  ;;  %v2936_v54 = vmax.f32 %v2904_v45, 0.0  ;;  %v2552_v12 = vsel %vm3827_vm12, %v2550_v23, %v2551_v58  ;;  %v2399_v58 = vld [vmem:[%s5063_s0 + $0xac] sm:$0xf]  ;;  %vm3154_vm3 = vcmask 1047559  }
 0x118   :  { %v2980_v16 = vmax.f32 %v2978_v44, %v2979_v9  ;;  %v2299_v11 = vadd.f32 %v2197_v19, %v1503_v56  ;;  %v1604_v19 = vld [vmem:[%s5063_s0 + $0xb0] sm:$0x3] }
 0x119   :  { %v2708_v63 = vpop.f32.mrf.mxu0  ;;  %3395 = vmatmul.msk.bf16.gmra.mxu2 %vm150_vm0, %v1311_v34  ;;  %v2016_v34 = vshll.u32 %v1603_v52, 16  ;;  %v2023_v47 = vshrl.u32 %v1604_v19, 16  ;;  %v2026_v49 = vshll.u32 %v1604_v19, 16  ;;  %v2597_v52 = vunpack.c.l.b16 %v2549_v8 }
 0x11a   :  { %v2981_v27 = vrot.slane %v2980_v16, 1  ;;  %v2807_v38 = vadd.f32 %v2705_v22, %v2299_v11  ;;  %v1992_v22 = vsel %vm3819_vm11, %v1983_v43, %v1991_v50  ;;  %v2006_v50 = vrot.slane %v2004_v25, 5 }
 0x11b   :  { %v2089_v46 = vunpack.c.l.b16 %v1992_v22  ;;  %v2015_v11 = vrot.slane %v2013_v17, 5  ;;  %v2018_v43 = vrot.slane %v2016_v34, 6  ;;  %v997_v25 = vadd.f32 %v4687_v6, %v4510_v28  ;;  %v2398_v22 = vld [vmem:[%s5063_s0 + $0xa8] sm:$0xc]  ;;  %v2400_v34 = vld [vmem:[%s5063_s0 + $0xb0] sm:$0x3] }
 0x11c   :  { %3419 = vmatmul.msk.bf16.gmra.mxu3 %vm150_vm0, %v2107_v40  ;;  %3459 = vmatmul.msk.bf16.gmra.mxu0 %vm150_vm0, %v2615_v5  ;;  %v2982_v60 = vmax.f32 %v2980_v16, %v2981_v27  ;;  %v2905_v61 = vadd.f32 %v4630_v39, %v2807_v38  ;;  %v1404_v44 = vpop.f32.mrf.mxu2  ;;  %v2002_v5 = vsel %vm3819_vm11, %v1993_v33, %v2001_v14  ;;  %v2009_v16 = vrot.slane %v2007_v36, 6  ;;  %v1094_v14 = vld [vmem:[%s5063_s0 + $0xa8] sm:$0xe] }
 0x11d   :  { %v1504_v9 = vadd.f32 %v1404_v44, %v4545_v10  ;;  %v1095_v10 = vld [vmem:[%s5063_s0 + $0xac] sm:$0xf]  ;;  %v2090_v38 = vunpack.c.l.b16 %v2002_v5  ;;  %v2598_v33 = vunpack.c.l.b16 %v2552_v12  ;;  %v2019_v44 = vor.u32 %v2018_v43, %v2015_v11 }
 0x11e   :  { %v3076_v40 = vpack.c.bf16 %v2982_v60, %v2982_v60  ;;  %v2937_v4 = vmax.f32 %v2905_v61, 0.0  ;;  %v1251_v23 = vrot.slane %v1095_v10, 5  ;;  %v2010_v61 = vor.u32 %v2009_v16, %v2006_v50 }
 0x11f   :  { %v2200_v56 = vpop.f32.mrf.mxu3  ;;  %v2025_v8 = vrot.slane %v2023_v47, 5  ;;  %v2028_v17 = vrot.slane %v2026_v49, 6  ;;  %v2555_v28 = vrot.slane %v2399_v58, 6  ;;  %v3437_v5 = vrot.slane %v2398_v22, 10 }
 0x120   :  { %v3128_v13 = vunpack.c.l.b16 %v3076_v40  ;;  %v2983_v24 = vmax.f32 %v2936_v54, %v2937_v4  ;;  %v2300_v29 = vadd.f32 %v2200_v56, %v1504_v9  ;;  %v2108_v40 = vpack.c.b16 %v2090_v38, %v2089_v46  ;;  %v4882_v4 = vpop.f32.mrf.mxu1  ;;  %v1605_v46 = vld [vmem:[%s5063_s0 + $0xb4] sm:$0xe] }
 0x121   :  { %v2710_v41 = vpop.f32.mrf.mxu0  ;;  %v3373_v54 = vrot.slane %v1094_v14, 9  ;;  %v2616_v9 = vpack.c.b16 %v2598_v33, %v2597_v52  ;;  %v1253_v56 = vrot.slane %v1251_v23, 4  ;;  %v2021_v16 = vrot.slane %v2019_v44, 4 }
 0x122   :  { %v4863_v20 = vsel %vm3144_vm14, %v3128_v13, %v4806_v15  ;;  %v2984_v27 = vrot.slane %v2983_v24, 4  ;;  %v2808_v45 = vadd.f32 %v2708_v63, %v2300_v29  ;;  %v1312_v15 = vpack.c.b16 %v1294_v2, %v1293_v31  ;;  %v1096_v63 = vld [vmem:[%s5063_s0 + $0xb0] sm:$0x1] }
 0x123   :  { %v1254_v19 = vrot.slane %v1096_v63, 5  ;;  %v2558_v29 = vrot.slane %v2400_v34, 6  ;;  %v2029_v11 = vor.u32 %v2028_v17, %v2025_v8  ;;  %v2557_v43 = vrot.slane %v2555_v28, 4 }
 0x124   :  { %v2985_v60 = vmax.f32 %v2983_v24, %v2984_v27  ;;  %v1406_v36 = vpop.f32.mrf.mxu2  ;;  %v2011_v24 = vrot.slane %v2010_v61, 4  ;;  %v2906_v10 = vadd.f32 %v4623_v7, %v2808_v45  ;;  %v998_v27 = vadd.f32 %v4741_v32, %v4080_v21  ;;  %v1606_v32 = vld [vmem:[%s5063_s0 + $0xb8] sm:$0xf] }
 0x125   :  { %v1505_v31 = vadd.f32 %v1406_v36, %v997_v25  ;;  %v1252_v45 = vsel %vm3810_vm10, %v3373_v54, %v1251_v23  ;;  %v2556_v21 = vsel %vm3827_vm12, %v3437_v5, %v2555_v28  ;;  %v2030_v23 = vsel %vm3819_vm11, %v2021_v16, %v2029_v11  ;;  %v1098_v16 = vld [vmem:[%s5063_s0 + $0xb8] sm:$0xf] }
 0x126   :  { %v2986_v6 = vrot.slane %v2985_v60, 2  ;;  %v2020_v52 = vsel %vm3819_vm11, %v2011_v24, %v2019_v44  ;;  %v2938_v33 = vmax.f32 %v2906_v10, 0.0  ;;  %v2559_v25 = vsel %vm3827_vm12, %v2557_v43, %v2558_v29 }
 0x127   :  { %v2202_v2 = vpop.f32.mrf.mxu3  ;;  %v2035_v36 = vshll.u32 %v1605_v46, 16  ;;  %v1295_v44 = vunpack.c.l.b16 %v1252_v45  ;;  %v2041_v17 = vshrl.u32 %v1606_v32, 16  ;;  %v2044_v34 = vshll.u32 %v1606_v32, 16 }
 0x128   :  { %v2987_v12 = vmax.f32 %v2985_v60, %v2986_v6  ;;  %v2301_v50 = vadd.f32 %v2202_v2, %v1505_v31  ;;  %v2032_v60 = vshrl.u32 %v1605_v46, 16  ;;  %v2091_v54 = vunpack.c.l.b16 %v2020_v52 }
 0x129   :  { %v2713_v13 = vpop.f32.mrf.mxu0  ;;  %3396 = vmatmul.msk.bf16.gmra.mxu2 %vm150_vm0, %v1312_v15  ;;  %v2599_v5 = vunpack.c.l.b16 %v2556_v21  ;;  %v2037_v11 = vrot.slane %v2035_v36, 6  ;;  %v2043_v43 = vrot.slane %v2041_v17, 5 }
 0x12a   :  { %v2988_v47 = vrot.slane %v2987_v12, 1  ;;  %v2809_v49 = vadd.f32 %v2710_v41, %v2301_v50  ;;  %v1255_v41 = vsel %vm3810_vm10, %v1253_v56, %v1254_v19  ;;  %v4915_v56 = vpop.f32.mrf.mxu1  ;;  %v2092_v19 = vunpack.c.l.b16 %v2030_v23 }
 0x12b   :  { %v1296_v8 = vunpack.c.l.b16 %v1255_v41  ;;  %v2034_v50 = vrot.slane %v2032_v60, 5 }
 0x12c   :  { %3420 = vmatmul.msk.bf16.gmra.mxu3 %vm150_vm0, %v2108_v40  ;;  %3460 = vmatmul.msk.bf16.gmra.mxu0 %vm150_vm0, %v2616_v9  ;;  %v2989_v38 = vmax.f32 %v2987_v12, %v2988_v47  ;;  %v2907_v58 = vadd.f32 %v4630_v39, %v2809_v49  ;;  %v1409_v14 = vpop.f32.mrf.mxu2  ;;  %v3526_v40 = vld [vmem:[%s5066_s3 + $0x28] sm:$0xff]  ;;  %v1607_v9 = vld [vmem:[%s5063_s0 + $0xbc] sm:$0x3]  ;;  %v2600_v12 = vunpack.c.l.b16 %v2559_v25  ;;  %v2046_v47 = vrot.slane %v2044_v34, 6 }
 0x12d   :  { %v1506_v61 = vadd.f32 %v1409_v14, %v998_v27  ;;  %3215 = vmatpush.bf16.msra.mxu1 %v3526_v40  ;;  %v2051_v49 = vshrl.u32 %v1607_v9, 16  ;;  %v2054_v46 = vshll.u32 %v1607_v9, 16  ;;  %v999_v27 = vadd.f32 %v4774_v30, %v4125_v0  ;;  %v1097_v14 = vld [vmem:[%s5063_s0 + $0xb4] sm:$0xe]  ;;  %v1099_v0 = vld [vmem:[%s5063_s0 + $0xbc] sm:$0x1] }
 0x12e   :  { %v3077_v15 = vpack.c.bf16 %v2989_v38, %v2989_v38  ;;  %v2939_v63 = vmax.f32 %v2907_v58, 0.0  ;;  %v1313_v38 = vpack.c.b16 %v1296_v8, %v1295_v44  ;;  %v2109_v32 = vpack.c.b16 %v2092_v19, %v2091_v54  ;;  %v2403_v34 = vld [vmem:[%s5063_s0 + $0xbc] sm:$0x3] }
 0x12f   :  { %v2205_v22 = vpop.f32.mrf.mxu3  ;;  %v2038_v30 = vor.u32 %v2037_v11, %v2034_v50  ;;  %v2047_v23 = vor.u32 %v2046_v47, %v2043_v43  ;;  %v2053_v25 = vrot.slane %v2051_v49, 5  ;;  %v2056_v60 = vrot.slane %v2054_v46, 6 }
 0x130   :  { %v3129_v28 = vunpack.c.l.b16 %v3077_v15  ;;  %v2990_v6 = vmax.f32 %v2938_v33, %v2939_v63  ;;  %v2302_v31 = vadd.f32 %v2205_v22, %v1506_v61  ;;  %v2617_v33 = vpack.c.b16 %v2600_v12, %v2599_v5  ;;  %v2401_v22 = vld [vmem:[%s5063_s0 + $0xb4] sm:$0xc] }
 0x131   :  { %v2715_v2 = vpop.f32.mrf.mxu0  ;;  %v1000_v44 = vadd.f32 %v4814_v35, %v4110_v51  ;;  %v3374_v8 = vrot.slane %v1097_v14, 9  ;;  %v1261_v40 = vrot.slane %v1099_v0, 5  ;;  %v2039_v51 = vrot.slane %v2038_v30, 4 }
 0x132   :  { %v4919_v24 = vsel %vm3146_vm15, %v3129_v28, %v4863_v20  ;;  %v2991_v29 = vrot.slane %v2990_v6, 4  ;;  %v2810_v10 = vadd.f32 %v2713_v13, %v2302_v31  ;;  %v1258_v20 = vrot.slane %v1098_v16, 5  ;;  %v2402_v13 = vld [vmem:[%s5063_s0 + $0xb8] sm:$0xf]  ;;  %v4945_v54 = vpop.f32.mrf.mxu1 }
 0x133   :  { %v2562_v36 = vrot.slane %v2402_v13, 6  ;;  %v2049_v35 = vrot.slane %v2047_v23, 4  ;;  %v2057_v9 = vor.u32 %v2056_v60, %v2053_v25  ;;  %v3438_v19 = vrot.slane %v2401_v22, 10 }
 0x134   :  { %v2992_v45 = vmax.f32 %v2990_v6, %v2991_v29  ;;  %v1411_v41 = vpop.f32.mrf.mxu2  ;;  %v1260_v17 = vrot.slane %v1258_v20, 4  ;;  %v2908_v6 = vadd.f32 %v4623_v7, %v2810_v10  ;;  %v2565_v29 = vrot.slane %v2403_v34, 6 }
 0x135   :  { %v1507_v52 = vadd.f32 %v1411_v41, %v999_v27  ;;  %v2564_v50 = vrot.slane %v2562_v36, 4  ;;  %v1259_v10 = vsel %vm3810_vm10, %v3374_v8, %v1258_v20  ;;  %v2048_v27 = vsel %vm3819_vm11, %v2039_v51, %v2047_v23 }
 0x136   :  { %v2993_v58 = vrot.slane %v2992_v45, 2  ;;  %v2940_v11 = vmax.f32 %v2908_v6, 0.0  ;;  %v1262_v46 = vsel %vm3810_vm10, %v1260_v17, %v1261_v40  ;;  %v2563_v41 = vsel %vm3827_vm12, %v3438_v19, %v2562_v36 }
 0x137   :  { %v2207_v21 = vpop.f32.mrf.mxu3  ;;  %v1298_v14 = vunpack.c.l.b16 %v1262_v46  ;;  %v2093_v0 = vunpack.c.l.b16 %v2048_v27  ;;  %v2601_v30 = vunpack.c.l.b16 %v2563_v41  ;;  %v1001_v25 = vadd.f32 %v4846_v57, %v4157_v37 }
 0x138   :  { %v2994_v15 = vmax.f32 %v2992_v45, %v2993_v58  ;;  %v2303_v63 = vadd.f32 %v2207_v21, %v1507_v52  ;;  %v2058_v45 = vsel %vm3819_vm11, %v2049_v35, %v2057_v9  ;;  %v2566_v52 = vsel %vm3827_vm12, %v2564_v50, %v2565_v29 }
 0x139   :  { %v2718_v61 = vpop.f32.mrf.mxu0  ;;  %3397 = vmatmul.msk.bf16.gmra.mxu2 %vm150_vm0, %v1313_v38  ;;  %v1297_v21 = vunpack.c.l.b16 %v1259_v10  ;;  %v2094_v48 = vunpack.c.l.b16 %v2058_v45  ;;  %v2602_v23 = vunpack.c.l.b16 %v2566_v52  ;;  %v1002_v37 = vadd.f32 %v4882_v4, %v4207_v18 }
 0x13a   :  { %v2995_v28 = vrot.slane %v2994_v15, 1  ;;  %v2811_v31 = vadd.f32 %v2715_v2, %v2303_v63 }
 0x13b   :  { %v2110_v8 = vpack.c.b16 %v2094_v48, %v2093_v0 }
 0x13c   :  { %3421 = vmatmul.msk.bf16.gmra.mxu3 %vm150_vm0, %v2109_v32  ;;  %3461 = vmatmul.msk.bf16.gmra.mxu0 %vm150_vm0, %v2617_v33  ;;  %v2996_v5 = vmax.f32 %v2994_v15, %v2995_v28  ;;  %v2909_v12 = vadd.f32 %v4630_v39, %v2811_v31  ;;  %v1414_v2 = vpop.f32.mrf.mxu2  ;;  %v4966_v15 = vpop.f32.mrf.mxu1 }
 0x13d   :  { %v1508_v47 = vadd.f32 %v1414_v2, %v1000_v44  ;;  %v1314_v44 = vpack.c.b16 %v1298_v14, %v1297_v21 }
 0x13e   :  { %v3078_v16 = vpack.c.bf16 %v2996_v5, %v2996_v5  ;;  %v2941_v43 = vmax.f32 %v2909_v12, 0.0 }
 0x13f   :  { %v2210_v49 = vpop.f32.mrf.mxu3 }
 0x140   :  { %v3130_v38 = vunpack.c.l.b16 %v3078_v16  ;;  %v2997_v13 = vmax.f32 %v2940_v11, %v2941_v43  ;;  %v2304_v20 = vadd.f32 %v2210_v49, %v1508_v47  ;;  %v3525_v16 = vld [vmem:[%s5066_s3 + $0x20] sm:$0xff]  ;;  %v1003_v11 = vadd.f32 %v4915_v56, %v4245_v59 }
 0x141   :  { %v2720_v58 = vpop.f32.mrf.mxu0  ;;  %3216 = vmatpush.bf16.msra.mxu1 %v3525_v16  ;;  %v1004_v59 = vadd.f32 %v4945_v54, %v4302_v62 }
 0x142   :  { %v3149_v42 = vsel %vm3148_vm1, %v3130_v38, %v4919_v24  ;;  %v2998_v32 = vrot.slane %v2997_v13, 4  ;;  %v2812_v33 = vadd.f32 %v2718_v61, %v2304_v20  ;;  %v2618_v24 = vpack.c.b16 %v2602_v23, %v2601_v30 }
 0x144   :  { %v2999_v60 = vmax.f32 %v2997_v13, %v2998_v32  ;;  %v1416_v63 = vpop.f32.mrf.mxu2  ;;  %v2910_v6 = vadd.f32 %v4623_v7, %v2812_v33  ;;  %v921_v7 = vpop.f32.mrf.mxu1 }
 0x145   :  { %v1509_v22 = vadd.f32 %v1416_v63, %v1001_v25 }
 0x146   :  { %v3000_v53 = vrot.slane %v2999_v60, 2  ;;  %v2942_v9 = vmax.f32 %v2910_v6, 0.0 }
 0x147   :  { %v2212_v36 = vpop.f32.mrf.mxu3 }
 0x148   :  { %v3001_v17 = vmax.f32 %v2999_v60, %v3000_v53  ;;  %v2305_v61 = vadd.f32 %v2212_v36, %v1509_v22 }
 0x149   :  { %v2723_v34 = vpop.f32.mrf.mxu0  ;;  %3398 = vmatmul.msk.bf16.gmra.mxu2 %vm150_vm0, %v1314_v44  ;;  %v1005_v44 = vadd.f32 %v4966_v15, %v4335_v26 }
 0x14a   :  { %v3002_v28 = vrot.slane %v3001_v17, 1  ;;  %v2813_v31 = vadd.f32 %v2720_v58, %v2305_v61  ;;  %v4984_v58 = vld [vmem:[%s5065_s2] sm:$0xff] }
 0x14c   :  { %3422 = vmatmul.msk.bf16.gmra.mxu3 %vm150_vm0, %v2110_v8  ;;  %3462 = vmatmul.msk.bf16.gmra.mxu0 %vm150_vm0, %v2618_v24  ;;  %v3003_v57 = vmax.f32 %v3001_v17, %v3002_v28  ;;  %v2911_v40 = vadd.f32 %v4630_v39, %v2813_v31  ;;  %v1419_v51 = vpop.f32.mrf.mxu2  ;;  %v923_v13 = vpop.f32.mrf.mxu1  ;;  %vm3152_vm0 = vcmask 1046534  }
 0x14d   :  { %v1510_v5 = vadd.f32 %v1419_v51, %v1002_v37  ;;  %v1006_v51 = vadd.f32 %v921_v7, %v4397_v55  ;;  %v3524_v55 = vld [vmem:[%s5066_s3 + $0x18] sm:$0xff] }
 0x14e   :  { %v3079_v35 = vpack.c.bf16 %v3003_v57, %v3003_v57  ;;  %v2943_v19 = vmax.f32 %v2911_v40, 0.0  ;;  %3217 = vmatpush.bf16.msra.mxu1 %v3524_v55 }
 0x14f   :  { %v2215_v12 = vpop.f32.mrf.mxu3 }
 0x150   :  { %v3131_v50 = vunpack.c.l.b16 %v3079_v35  ;;  %v3004_v29 = vmax.f32 %v2942_v9, %v2943_v19  ;;  %v2306_v2 = vadd.f32 %v2215_v12, %v1510_v5 }
 0x151   :  { %v2725_v10 = vpop.f32.mrf.mxu0 }
 0x152   :  { %v3005_v18 = vrot.slane %v3004_v29, 4  ;;  %v2814_v4 = vadd.f32 %v2723_v34, %v2306_v2  ;;  %v3151_v39 = vsel %vm3150_vm2, %v3131_v50, %v3149_v42  ;;  %v4992_v42 = vld [vmem:[%s5065_s2 + $0x8] sm:$0xff] }
 0x154   :  { %v3006_v43 = vmax.f32 %v3004_v29, %v3005_v18  ;;  %v1421_v47 = vpop.f32.mrf.mxu2  ;;  %v2912_v52 = vadd.f32 %v4984_v58, %v2814_v4  ;;  %v926_v36 = vpop.f32.mrf.mxu1 }
 0x155   :  { %v1511_v46 = vadd.f32 %v1421_v47, %v1003_v11 }
 0x156   :  { %v3007_v49 = vrot.slane %v3006_v43, 2  ;;  %v2944_v0 = vmax.f32 %v2912_v52, 0.0  ;;  %v1008_v52 = vadd.f32 %v926_v36, %v4488_v3 }
 0x157   :  { %v2217_v27 = vpop.f32.mrf.mxu3 }
 0x158   :  { %v3008_v45 = vmax.f32 %v3006_v43, %v3007_v49  ;;  %v2307_v41 = vadd.f32 %v2217_v27, %v1511_v46 }
 0x159   :  { %v2728_v38 = vpop.f32.mrf.mxu0 }
 0x15a   :  { %v3009_v20 = vrot.slane %v3008_v45, 1  ;;  %v2815_v21 = vadd.f32 %v2725_v10, %v2307_v41 }
 0x15c   :  { %v3010_v56 = vmax.f32 %v3008_v45, %v3009_v20  ;;  %v2913_v32 = vadd.f32 %v4992_v42, %v2815_v21  ;;  %v1424_v33 = vpop.f32.mrf.mxu2  ;;  %v928_v19 = vpop.f32.mrf.mxu1 }
 0x15d   :  { %v1512_v30 = vadd.f32 %v1424_v33, %v1004_v59 }
 0x15e   :  { %v3080_v14 = vpack.c.bf16 %v3010_v56, %v3010_v56  ;;  %v2945_v48 = vmax.f32 %v2913_v32, 0.0 }
 0x15f   :  { %v2220_v23 = vpop.f32.mrf.mxu3 }
 0x160   :  { %v3132_v25 = vunpack.c.l.b16 %v3080_v14  ;;  %v3011_v60 = vmax.f32 %v2944_v0, %v2945_v48  ;;  %v2308_v63 = vadd.f32 %v2220_v23, %v1512_v30 }
 0x161   :  { %v2730_v53 = vpop.f32.mrf.mxu0 }
 0x162   :  { %v3012_v62 = vrot.slane %v3011_v60, 4  ;;  %v2816_v54 = vadd.f32 %v2728_v38, %v2308_v63  ;;  %v3153_v22 = vsel %vm3152_vm0, %v3132_v25, %v3151_v39  ;;  %v1007_v39 = vadd.f32 %v923_v13, %v4444_v1  ;;  %v5091_v63 = vld [vmem:[#allocation15_spill] sm:$0xff] }
 0x164   :  { %v3013_v8 = vmax.f32 %v3011_v60, %v3012_v62  ;;  %v1426_v24 = vpop.f32.mrf.mxu2  ;;  %v2914_v57 = vadd.f32 %v4984_v58, %v2816_v54  ;;  %v931_v46 = vpop.f32.mrf.mxu1 }
 0x165   :  { %v1513_v61 = vadd.f32 %v1426_v24, %v1005_v44 }
 0x166   :  { %v3014_v17 = vrot.slane %v3013_v8, 2  ;;  %v2946_v15 = vmax.f32 %v2914_v57, 0.0 }
 0x167   :  { %v2222_v34 = vpop.f32.mrf.mxu3 }
 0x168   :  { %v3015_v28 = vmax.f32 %v3013_v8, %v3014_v17  ;;  %v2309_v6 = vadd.f32 %v2222_v34, %v1513_v61 }
 0x169   :  { %v2733_v31 = vpop.f32.mrf.mxu0 }
 0x16a   :  { %v3016_v37 = vrot.slane %v3015_v28, 1  ;;  %v2817_v40 = vadd.f32 %v2730_v53, %v2309_v6  ;;  %v1009_v53 = vadd.f32 %v928_v19, %v5091_v63 }
 0x16c   :  { %v3017_v35 = vmax.f32 %v3015_v28, %v3016_v37  ;;  %v2915_v9 = vadd.f32 %v4992_v42, %v2817_v40  ;;  %v1429_v5 = vpop.f32.mrf.mxu2  ;;  %v933_v23 = vpop.f32.mrf.mxu1  ;;  %v5092_v37 = vld [vmem:[#allocation6_spill] sm:$0xff] }
 0x16d   :  { %v1514_v50 = vadd.f32 %v1429_v5, %v1006_v51  ;;  %v1010_v57 = vadd.f32 %v931_v46, %v5092_v37  ;;  %v3522_v37 = vld [vmem:[%s5066_s3 + $0x8] sm:$0xff] }
 0x16e   :  { %v3081_v26 = vpack.c.bf16 %v3017_v35, %v3017_v35  ;;  %v2947_v12 = vmax.f32 %v2915_v9, 0.0 }
 0x16f   :  { %v2225_v29 = vpop.f32.mrf.mxu3 }
 0x170   :  { %v3133_v2 = vunpack.c.l.b16 %v3081_v26  ;;  %v3018_v10 = vmax.f32 %v2946_v15, %v2947_v12  ;;  %v2310_v16 = vadd.f32 %v2225_v29, %v1514_v50 }
 0x171   :  { %v2735_v18 = vpop.f32.mrf.mxu0 }
 0x172   :  { %v2818_v4 = vadd.f32 %v2733_v31, %v2310_v16  ;;  %v5005_v7 = vsel %vm3154_vm3, %v3133_v2, %v3153_v22  ;;  %v3019_v11 = vrot.slane %v3018_v10, 4 }
 0x174   :  { %v1431_v43 = vpop.f32.mrf.mxu2  ;;  %v3020_v27 = vmax.f32 %v3018_v10, %v3019_v11  ;;  %v2916_v38 = vadd.f32 %v4984_v58, %v2818_v4  ;;  %v5013_v31 = vpop.f32.mrf.mxu1  ;;  %v5093_v11 = vld [vmem:[#allocation7_spill] sm:$0xff] }
 0x175   :  { %v1515_v47 = vadd.f32 %v1431_v43, %v1007_v39  ;;  %v3523_v39 = vld [vmem:[%s5066_s3 + $0x10] sm:$0xff]  ;;  %v1011_v43 = vadd.f32 %v933_v23, %v5093_v11  ;;  %v5098_v11 = vld [vmem:[#allocation12_spill] sm:$0xff] }
 0x176   :  { %v3021_v21 = vrot.slane %v3020_v27, 2  ;;  %v2948_v32 = vmax.f32 %v2916_v38, 0.0  ;;  %3218 = vmatpush.bf16.msra.mxu1 %v3523_v39 }
 0x177   :  { %v2227_v49 = vpop.f32.mrf.mxu3 }
 0x178   :  { %v2311_v45 = vadd.f32 %v2227_v49, %v1515_v47  ;;  %v3022_v14 = vmax.f32 %v3020_v27, %v3021_v21 }
 0x179   :  { %v2738_v41 = vpop.f32.mrf.mxu0 }
 0x17a   :  { %v2819_v20 = vadd.f32 %v2735_v18, %v2311_v45  ;;  %v3023_v62 = vrot.slane %v3022_v14, 1  ;;  %3219 = vmatpush.bf16.msra.mxu1 %v3522_v37 }
 0x17c   :  { %v2917_v59 = vadd.f32 %v4992_v42, %v2819_v20  ;;  %v1434_v56 = vpop.f32.mrf.mxu2  ;;  %v3024_v8 = vmax.f32 %v3022_v14, %v3023_v62  ;;  %v938_v49 = vpop.f32.mrf.mxu1 }
 0x17d   :  { %v1516_v13 = vadd.f32 %v1434_v56, %v1008_v52 }
 0x17e   :  { %v2949_v1 = vmax.f32 %v2917_v59, 0.0  ;;  %v3082_v40 = vpack.c.bf16 %v3024_v8, %v3024_v8 }
 0x17f   :  { %v2230_v33 = vpop.f32.mrf.mxu3 }
 0x180   :  { %v3025_v0 = vmax.f32 %v2948_v32, %v2949_v1  ;;  %v2312_v48 = vadd.f32 %v2230_v33, %v1516_v13  ;;  %v3134_v50 = vunpack.c.l.b16 %v3082_v40 }
 0x181   :  { %v2740_v30 = vpop.f32.mrf.mxu0 }
 0x182   :  { %v3026_v25 = vrot.slane %v3025_v0, 4  ;;  %v2820_v60 = vadd.f32 %v2738_v41, %v2312_v48 }
 0x184   :  { %v3027_v54 = vmax.f32 %v3025_v0, %v3026_v25  ;;  %v1436_v3 = vpop.f32.mrf.mxu2  ;;  %v2918_v28 = vadd.f32 %v4984_v58, %v2820_v60 }
 0x185   :  { %v1517_v36 = vadd.f32 %v1436_v3, %v1009_v53 }
 0x186   :  { %v3028_v22 = vrot.slane %v3027_v54, 2  ;;  %v2950_v5 = vmax.f32 %v2918_v28, 0.0 }
 0x187   :  { %v2232_v44 = vpop.f32.mrf.mxu3 }
 0x188   :  { %v3029_v24 = vmax.f32 %v3027_v54, %v3028_v22  ;;  %v2313_v17 = vadd.f32 %v2232_v44, %v1517_v36 }
 0x189   :  { %v2743_v61 = vpop.f32.mrf.mxu0 }
 0x18a   :  { %v3030_v34 = vrot.slane %v3029_v24, 1  ;;  %v2821_v6 = vadd.f32 %v2740_v30, %v2313_v17  ;;  %v941_v30 = vpop.f32.mrf.mxu1 }
 0x18c   :  { %v3031_v51 = vmax.f32 %v3029_v24, %v3030_v34  ;;  %v2919_v35 = vadd.f32 %v4992_v42, %v2821_v6  ;;  %v1439_v9 = vpop.f32.mrf.mxu2 }
 0x18d   :  { %v1518_v15 = vadd.f32 %v1439_v9, %v1010_v57 }
 0x18e   :  { %v3083_v19 = vpack.c.bf16 %v3031_v51, %v3031_v51  ;;  %v2951_v26 = vmax.f32 %v2919_v35, 0.0  ;;  %v5094_v35 = vld [vmem:[#allocation9_spill] sm:$0xff] }
 0x18f   :  { %v2235_v12 = vpop.f32.mrf.mxu3  ;;  %v1013_v9 = vadd.f32 %v938_v49, %v5094_v35 }
 0x190   :  { %v3135_v29 = vunpack.c.l.b16 %v3083_v19  ;;  %v3032_v2 = vmax.f32 %v2950_v5, %v2951_v26  ;;  %v2314_v10 = vadd.f32 %v2235_v12, %v1518_v15  ;;  %v5095_v5 = vld [vmem:[#allocation11_spill] sm:$0xff]  ;;  %v5096_v12 = vld [vmem:[#allocation8_spill] sm:$0xff] }
 0x191   :  { %v2745_v16 = vpop.f32.mrf.mxu0 }
 0x192   :  { %v3156_v18 = vsel %vm3142_vm13, %v3135_v29, %v3134_v50  ;;  %v3033_v4 = vrot.slane %v3032_v2, 4  ;;  %v2822_v55 = vadd.f32 %v2743_v61, %v2314_v10  ;;  %v943_v8 = vpop.f32.mrf.mxu1  ;;  %v1012_v50 = vadd.f32 %v5013_v31, %v5096_v12 }
 0x193   :  { %v1015_v26 = vadd.f32 %v943_v8, %v5095_v5  ;;  %v5100_v8 = vld [vmem:[#allocation14_spill] sm:$0xff]  ;;  %v3521_v5 = vld [vmem:[%s5066_s3] sm:$0xff] }
 0x194   :  { %v3034_v47 = vmax.f32 %v3032_v2, %v3033_v4  ;;  %v1441_v46 = vpop.f32.mrf.mxu2  ;;  %v2920_v59 = vadd.f32 %v4984_v58, %v2822_v55  ;;  %v5097_v2 = vld [vmem:[#allocation10_spill] sm:$0xff]  ;;  %3220 = vmatpush.bf16.msra.mxu1 %v3521_v5 }
 0x195   :  { %v1519_v45 = vadd.f32 %v1441_v46, %v1011_v43  ;;  %v1014_v10 = vadd.f32 %v941_v30, %v5097_v2 }
 0x196   :  { %v3035_v27 = vrot.slane %v3034_v47, 2  ;;  %v2952_v14 = vmax.f32 %v2920_v59, 0.0 }
 0x197   :  { %v2237_v41 = vpop.f32.mrf.mxu3 }
 0x198   :  { %v3036_v38 = vmax.f32 %v3034_v47, %v3035_v27  ;;  %v2315_v20 = vadd.f32 %v2237_v41, %v1519_v45 }
 0x199   :  { %v2748_v52 = vpop.f32.mrf.mxu0 }
 0x19a   :  { %v3037_v21 = vrot.slane %v3036_v38, 1  ;;  %v2823_v56 = vadd.f32 %v2745_v16, %v2315_v20  ;;  %v946_v51 = vpop.f32.mrf.mxu1 }
 0x19b   :  { %v1016_v43 = vadd.f32 %v946_v51, %v5098_v11 }
 0x19c   :  { %v3038_v32 = vmax.f32 %v3036_v38, %v3037_v21  ;;  %v2921_v1 = vadd.f32 %v4992_v42, %v2823_v56  ;;  %v1444_v13 = vpop.f32.mrf.mxu2 }
 0x19e   :  { %v3084_v33 = vpack.c.bf16 %v3038_v32, %v3038_v32  ;;  %v2953_v0 = vmax.f32 %v2921_v1, 0.0  ;;  %v5099_v1 = vld [vmem:[#allocation13_spill] sm:$0xff] }
 0x19f   :  { %v2240_v48 = vpop.f32.mrf.mxu3 }
 0x1a0   :  { %v3136_v23 = vunpack.c.l.b16 %v3084_v33  ;;  %v3039_v25 = vmax.f32 %v2952_v14, %v2953_v0 }
 0x1a1   :  { %v2750_v60 = vpop.f32.mrf.mxu0 }
 0x1a2   :  { %v3157_v63 = vsel %vm3144_vm14, %v3136_v23, %v3156_v18  ;;  %v3040_v53 = vrot.slane %v3039_v25, 4  ;;  %v1520_v18 = vadd.f32 %v1444_v13, %v1012_v50  ;;  %v948_v46 = vpop.f32.mrf.mxu1 }
 0x1a3   :  { %v1017_v13 = vadd.f32 %v948_v46, %v5099_v1 }
 0x1a4   :  { %v3041_v62 = vmax.f32 %v3039_v25, %v3040_v53  ;;  %v1446_v54 = vpop.f32.mrf.mxu2  ;;  %v2316_v49 = vadd.f32 %v2240_v48, %v1520_v18 }
 0x1a5   :  { %v1521_v29 = vadd.f32 %v1446_v54, %v1013_v9 }
 0x1a6   :  { %v3042_v3 = vrot.slane %v3041_v62, 2  ;;  %v2824_v31 = vadd.f32 %v2748_v52, %v2316_v49 }
 0x1a7   :  { %v2242_v22 = vpop.f32.mrf.mxu3 }
 0x1a8   :  { %v3043_v36 = vmax.f32 %v3041_v62, %v3042_v3  ;;  %v2317_v55 = vadd.f32 %v2242_v22, %v1521_v29  ;;  %v2922_v14 = vadd.f32 %v4984_v58, %v2824_v31  ;;  %v5101_v29 = vld [vmem:[#allocation16_spill] sm:$0xff] }
 0x1a9   :  { %v2753_v44 = vpop.f32.mrf.mxu0 }
 0x1aa   :  { %v3044_v24 = vrot.slane %v3043_v36, 1  ;;  %v2825_v20 = vadd.f32 %v2750_v60, %v2317_v55  ;;  %v951_v60 = vpop.f32.mrf.mxu1  ;;  %v2954_v54 = vmax.f32 %v2922_v14, 0.0 }
 0x1ac   :  { %v3045_v17 = vmax.f32 %v3043_v36, %v3044_v24  ;;  %v1449_v61 = vpop.f32.mrf.mxu2  ;;  %v2923_v32 = vadd.f32 %v4992_v42, %v2825_v20  ;;  %v1018_v24 = vadd.f32 %v951_v60, %v5100_v8 }
 0x1ad   :  { %v1522_v4 = vadd.f32 %v1449_v61, %v1014_v10 }
 0x1ae   :  { %v3085_v34 = vpack.c.bf16 %v3045_v17, %v3045_v17  ;;  %v2955_v53 = vmax.f32 %v2923_v32, 0.0 }
 0x1af   :  { %v2245_v28 = vpop.f32.mrf.mxu3 }
 0x1b0   :  { %v3137_v6 = vunpack.c.l.b16 %v3085_v34  ;;  %v2318_v45 = vadd.f32 %v2245_v28, %v1522_v4 }
 0x1b1   :  { %v2755_v57 = vpop.f32.mrf.mxu0 }
 0x1b2   :  { %v5029_v40 = vsel %vm3146_vm15, %v3137_v6, %v3157_v63  ;;  %v2826_v59 = vadd.f32 %v2753_v44, %v2318_v45  ;;  %v3046_v44 = vmax.f32 %v2954_v54, %v2955_v53 }
 0x1b4   :  { %v1451_v19 = vpop.f32.mrf.mxu2  ;;  %v2924_v48 = vadd.f32 %v4984_v58, %v2826_v59  ;;  %v3047_v51 = vrot.slane %v3046_v44, 4 }
 0x1b5   :  { %v1523_v16 = vadd.f32 %v1451_v19, %v1015_v26  ;;  %v953_v26 = vpop.f32.mrf.mxu1 }
 0x1b6   :  { %v2956_v3 = vmax.f32 %v2924_v48, 0.0  ;;  %v3048_v50 = vmax.f32 %v3046_v44, %v3047_v51  ;;  %v1019_v2 = vadd.f32 %v953_v26, %v5101_v29 }
 0x1b7   :  { %v2247_v15 = vpop.f32.mrf.mxu3 }
 0x1b8   :  { %v2319_v47 = vadd.f32 %v2247_v15, %v1523_v16 }
 0x1b9   :  { %v2758_v39 = vpop.f32.mrf.mxu0 }
 0x1ba   :  { %v2827_v21 = vadd.f32 %v2755_v57, %v2319_v47 }
 0x1bc   :  { %v1454_v27 = vpop.f32.mrf.mxu2  ;;  %v2925_v33 = vadd.f32 %v4992_v42, %v2827_v21 }
 0x1bd   :  { %v1524_v41 = vadd.f32 %v1454_v27, %v1016_v43 }
 0x1be   :  { %v2957_v52 = vmax.f32 %v2925_v33, 0.0 }
 0x1bf   :  { %v2250_v38 = vpop.f32.mrf.mxu3 }
 0x1c0   :  { %v2320_v56 = vadd.f32 %v2250_v38, %v1524_v41  ;;  %v3053_v17 = vmax.f32 %v2956_v3, %v2957_v52 }
 0x1c1   :  { %v2760_v0 = vpop.f32.mrf.mxu0 }
 0x1c2   :  { %v2828_v23 = vadd.f32 %v2758_v39, %v2320_v56  ;;  %v3054_v9 = vrot.slane %v3053_v17, 4  ;;  %v3049_v39 = vrot.slane %v3048_v50, 2 }
 0x1c4   :  { %v1456_v30 = vpop.f32.mrf.mxu2  ;;  %v2926_v22 = vadd.f32 %v4984_v58, %v2828_v23  ;;  %v3055_v10 = vmax.f32 %v3053_v17, %v3054_v9  ;;  %v3050_v41 = vmax.f32 %v3048_v50, %v3049_v39 }
 0x1c5   :  { %v1525_v25 = vadd.f32 %v1456_v30, %v1017_v13 }
 0x1c6   :  { %v2958_v28 = vmax.f32 %v2926_v22, 0.0  ;;  %v3056_v43 = vrot.slane %v3055_v10, 2  ;;  %v3051_v56 = vrot.slane %v3050_v41, 1 }
 0x1c7   :  { %v2252_v63 = vpop.f32.mrf.mxu3 }
 0x1c8   :  { %v2321_v62 = vadd.f32 %v2252_v63, %v1525_v25  ;;  %v3057_v38 = vmax.f32 %v3055_v10, %v3056_v43  ;;  %v3052_v14 = vmax.f32 %v3050_v41, %v3051_v56 }
 0x1c9   :  { %v2763_v35 = vpop.f32.mrf.mxu0 }
 0x1ca   :  { %v2829_v36 = vadd.f32 %v2760_v0, %v2321_v62  ;;  %v3058_v32 = vrot.slane %v3057_v38, 1  ;;  %v3086_v25 = vpack.c.bf16 %v3052_v14, %v3052_v14 }
 0x1cc   :  { %v2927_v61 = vadd.f32 %v4992_v42, %v2829_v36  ;;  %v1459_v34 = vpop.f32.mrf.mxu2  ;;  %v3059_v0 = vmax.f32 %v3057_v38, %v3058_v32  ;;  %v3138_v52 = vunpack.c.l.b16 %v3086_v25 }
 0x1cd   :  { %v1526_v37 = vadd.f32 %v1459_v34, %v1018_v24 }
 0x1ce   :  { %v2959_v6 = vmax.f32 %v2927_v61, 0.0  ;;  %v3159_v22 = vsel %vm3148_vm1, %v3138_v52, %v5029_v40  ;;  %v3538_v61 = vld [vmem:[%s5067_s4] ss:$0 sm:$0xff] }
 0x1cf   :  { %v2255_v57 = vpop.f32.mrf.mxu3 }
 0x1d0   :  { %v3060_v19 = vmax.f32 %v2958_v28, %v2959_v6  ;;  %v2322_v12 = vadd.f32 %v2255_v57, %v1526_v37 }
 0x1d1   :  { %v2765_v49 = vpop.f32.mrf.mxu0 }
 0x1d2   :  { %v3061_v15 = vrot.slane %v3060_v19, 4  ;;  %v2830_v4 = vadd.f32 %v2763_v35, %v2322_v12 }
 0x1d4   :  { %v3062_v16 = vmax.f32 %v3060_v19, %v3061_v15  ;;  %v1461_v18 = vpop.f32.mrf.mxu2  ;;  %v2928_v27 = vadd.f32 %v4984_v58, %v2830_v4  ;;  %v3087_v58 = vpack.c.bf16 %v3059_v0, %v3059_v0 }
 0x1d5   :  { %v1527_v55 = vadd.f32 %v1461_v18, %v1019_v2 }
 0x1d6   :  { %v3063_v46 = vrot.slane %v3062_v16, 2  ;;  %v2960_v31 = vmax.f32 %v2928_v27, 0.0 }
 0x1d7   :  { %v2257_v11 = vpop.f32.mrf.mxu3 }
 0x1d8   :  { %v2323_v47 = vadd.f32 %v2257_v11, %v1527_v55  ;;  %v3064_v21 = vmax.f32 %v3062_v16, %v3063_v46 }
 0x1da   :  { %v2831_v45 = vadd.f32 %v2765_v49, %v2323_v47  ;;  %v3065_v13 = vrot.slane %v3064_v21, 1 }
 0x1dc   :  { %v2929_v20 = vadd.f32 %v4992_v42, %v2831_v45  ;;  %v3066_v48 = vmax.f32 %v3064_v21, %v3065_v13  ;;  %v3139_v42 = vunpack.c.l.b16 %v3087_v58 }
 0x1de   :  { %v2961_v59 = vmax.f32 %v2929_v20, 0.0  ;;  %v3088_v60 = vpack.c.bf16 %v3066_v48, %v3066_v48  ;;  %v3160_v44 = vsel %vm3150_vm2, %v3139_v42, %v3159_v22 }
 0x1e0   :  { %v3067_v1 = vmax.f32 %v2960_v31, %v2961_v59  ;;  %v3140_v54 = vunpack.c.l.b16 %v3088_v60 }
 0x1e2   :  { %v3068_v33 = vrot.slane %v3067_v1, 4  ;;  %v3161_v8 = vsel %vm3152_vm0, %v3140_v54, %v3160_v44 }
 0x1e4   :  { %v3069_v30 = vmax.f32 %v3067_v1, %v3068_v33 }
 0x1e6   :  { %v3070_v23 = vrot.slane %v3069_v30, 2 }
 0x1e8   :  { %v3071_v63 = vmax.f32 %v3069_v30, %v3070_v23 }
 0x1ea   :  { %v3072_v53 = vrot.slane %v3071_v63, 1 }
 0x1ec   :  { %v3073_v62 = vmax.f32 %v3071_v63, %v3072_v53 }
 0x1ee   :  { %v3089_v3 = vpack.c.bf16 %v3073_v62, %v3073_v62 }
 0x1f0   :  { %v3141_v36 = vunpack.c.l.b16 %v3089_v3 }
 0x1f2   :  { %v3162_v24 = vsel %vm3154_vm3, %v3141_v36, %v3161_v8 }
 0x1f3   :  { %v3163_v17 = vpack.c.b16 %v3162_v24, %v5005_v7 }
 0x1f5   :  { %3221 = vmatmul.bf16.vlgmr.msra.gmra.mxu1 %v3163_v17 }
 0x272   :  { %v3222_v34 = vpop.f32.mrf.mxu1 }
 0x273   :  { %v3223_v28 = vadd.f32 %v3538_v61, %v3222_v34 }
 0x275   :  { %3227 = vst [vmem:[#allocation3] sm:$0xff] %v3223_v28 }
 0x27a   :  { %v3224_v40 = vpop.f32.mrf.mxu1 }
 0x27b   :  { %v3225_v6 = vadd.f32 %v3538_v61, %v3224_v40 }
 0x27d   :  { %3228 = vst [vmem:[#allocation3 + $0x8] sm:$0xff] %v3225_v6 }
 0x27e   :  { %3241 = dma.vmem_to_hbm [thread:$0]  %s3234_s12, 256, %s3236_s15, [#allocation4], %s3568_s16, %s3568_s16, %s3569_s17  }
 0x27f   :  { %3565 = dma.done.wait [#allocation4], 256  }
 0x280   :  { %3566 = vsyncadd [#allocation4], 4294967040 }
 0x281   :  { %3246 = vsyncpa [#allocation4], 1 }

</bundles_post_ra>
